<compile_context>
chip_gen: v7x
topology: tpu7x:2x2x1
jax: 0.10.0
libtpu: 0.0.40
codegen_flags: <defaults>
</compile_context>

<pallas_src>
import jax
import jax.numpy as jnp
from jax.experimental import pallas as pl
from jax.experimental.pallas import tpu as pltpu


def gru_last_linear_sigmoid_kernel(x_ref, w_ih_ref, w_hh_ref, b_fold_ref,
                                   b_hh_n_ref, w_ho_ref, b_o_ref, out_ref):
    # x_ref:      (T, B, F)   time-major input
    # w_ih_ref:   (3, F, H)   per-gate input->hidden weights (r, z, n)
    # w_hh_ref:   (3, H, H)   per-gate hidden->hidden weights (r, z, n)
    # b_fold_ref: (3, 1, H)   [b_ih_r + b_hh_r, b_ih_z + b_hh_z, b_ih_n]
    # b_hh_n_ref: (1, H)      b_hh_n (must stay under the r* multiply)
    # w_ho_ref:   (H, O), b_o_ref: (1, O)
    T, B, _ = x_ref.shape
    H = w_hh_ref.shape[2]

    # Per-gate weights: whole-tile leading-axis indexing (no lane sub-slices).
    w_ih_r, w_ih_z, w_ih_n = w_ih_ref[0], w_ih_ref[1], w_ih_ref[2]
    w_hh_r, w_hh_z, w_hh_n = w_hh_ref[0], w_hh_ref[1], w_hh_ref[2]

    # Hoist all bias broadcasts out of the recurrence.
    b_r = jnp.broadcast_to(b_fold_ref[0], (B, H))
    b_z = jnp.broadcast_to(b_fold_ref[1], (B, H))
    b_n = jnp.broadcast_to(b_fold_ref[2], (B, H))
    b_hn = jnp.broadcast_to(b_hh_n_ref[...], (B, H))

    f32 = jnp.float32

    # t = 0 : h0 == 0, so all h @ W_hh terms vanish.
    x0 = x_ref[0]
    r = jax.nn.sigmoid(jnp.dot(x0, w_ih_r, preferred_element_type=f32) + b_r)
    z = jax.nn.sigmoid(jnp.dot(x0, w_ih_z, preferred_element_type=f32) + b_z)
    n = jnp.tanh(jnp.dot(x0, w_ih_n, preferred_element_type=f32) + b_n
                 + r * b_hn)
    h = (1.0 - z) * n

    # t = 1 .. T-1, fully unrolled.
    for t in range(1, T):
        x_t = x_ref[t]
        # Input projections: independent of h, free to overlap with the chain.
        ir = jnp.dot(x_t, w_ih_r, preferred_element_type=f32) + b_r
        iz = jnp.dot(x_t, w_ih_z, preferred_element_type=f32) + b_z
        in_ = jnp.dot(x_t, w_ih_n, preferred_element_type=f32) + b_n
        # Hidden projections: the serial critical path.
        hr = jnp.dot(h, w_hh_r, preferred_element_type=f32)
        hz = jnp.dot(h, w_hh_z, preferred_element_type=f32)
        hn = jnp.dot(h, w_hh_n, preferred_element_type=f32)
        r = jax.nn.sigmoid(ir + hr)
        z = jax.nn.sigmoid(iz + hz)
        n = jnp.tanh(in_ + r * (hn + b_hn))
        h = (1.0 - z) * n + z * h

    logits = jnp.dot(h, w_ho_ref[...], preferred_element_type=f32) + b_o_ref[...]
    out_ref[...] = jax.nn.sigmoid(logits).astype(out_ref.dtype)


@jax.jit
def affective_ec_forward(x, params):
    """x: (B, T, F) batch_first float32; params in PyTorch layout -> (B, O)."""
    B, T, F = x.shape
    H = params["weight_hh"].shape[1]
    O = params["weight_ho"].shape[0]

    # ---- layout plumbing (pure XLA, outside the kernel) ----
    x_tm = jnp.transpose(x, (1, 0, 2))                                      # (T,B,F)
    w_ih3 = jnp.transpose(params["weight_ih"].reshape(3, H, F), (0, 2, 1))  # (3,F,H)
    w_hh3 = jnp.transpose(params["weight_hh"].reshape(3, H, H), (0, 2, 1))  # (3,H,H)
    b_ih3 = params["bias_ih"].reshape(3, 1, H)
    b_hh3 = params["bias_hh"].reshape(3, 1, H)
    # Fold biases: r/z gates take b_ih + b_hh; n gate takes b_ih only
    # (b_hh_n must remain inside the r* term of the GRU update).
    b_fold = jnp.concatenate([b_ih3[:2] + b_hh3[:2], b_ih3[2:3]], axis=0)   # (3,1,H)
    b_hh_n = b_hh3[2]                                                       # (1,H)
    w_ho = params["weight_ho"].T                                            # (H,O)
    b_o = params["bias_o"].reshape(1, O)

    vmem = pl.BlockSpec(memory_space=pltpu.MemorySpace.VMEM)
    return pl.pallas_call(
        gru_last_linear_sigmoid_kernel,
        out_shape=jax.ShapeDtypeStruct((B, O), jnp.float32),
        in_specs=[vmem] * 7,
        out_specs=vmem,
    )(x_tm, w_ih3, w_hh3, b_fold, b_hh_n, w_ho, b_o)


def init_params(key, feat_dim, hidden_dim, out_dim):
    """PyTorch-layout params, uniform(-1/sqrt(H), 1/sqrt(H)) like nn.GRU/Linear."""
    ks = jax.random.split(key, 6)
    k_rnn = 1.0 / jnp.sqrt(hidden_dim)
    k_lin = 1.0 / jnp.sqrt(hidden_dim)
    u = lambda k, shape, s: jax.random.uniform(k, shape, jnp.float32, -s, s)
    return dict(
        weight_ih=u(ks[0], (3 * hidden_dim, feat_dim), k_rnn),   # (3H, F)
        weight_hh=u(ks[1], (3 * hidden_dim, hidden_dim), k_rnn), # (3H, H)
        bias_ih=u(ks[2], (3 * hidden_dim,), k_rnn),              # (3H,)
        bias_hh=u(ks[3], (3 * hidden_dim,), k_rnn),              # (3H,)
        weight_ho=u(ks[4], (out_dim, hidden_dim), k_lin),        # (O, H)
        bias_o=u(ks[5], (out_dim,), k_lin),                      # (O,)
    )


def reference_forward(x, params):
    """Pure-JAX reference with PyTorch GRU semantics (gate order r, z, n)."""
    B, T, F = x.shape
    H = params["weight_hh"].shape[1]
    w_ih_t = params["weight_ih"].T    # (F, 3H)
    w_hh_t = params["weight_hh"].T    # (H, 3H)
    b_ih = params["bias_ih"]
    b_hh = params["bias_hh"]
    h = jnp.zeros((B, H), jnp.float32)
    for t in range(T):
        xg = x[:, t, :] @ w_ih_t + b_ih
        hg = h @ w_hh_t + b_hh
        r = jax.nn.sigmoid(xg[:, :H] + hg[:, :H])
        z = jax.nn.sigmoid(xg[:, H:2 * H] + hg[:, H:2 * H])
        n = jnp.tanh(xg[:, 2 * H:] + r * hg[:, 2 * H:])
        h = (1.0 - z) * n + z * h
    return jax.nn.sigmoid(h @ params["weight_ho"].T + params["bias_o"])


if __name__ == "__main__":
    B, T, FEAT, HIDDEN, OUT = 2, 8, 16, 32, 8

    key = jax.random.PRNGKey(0)
    k_x, k_p = jax.random.split(key)
    x = jax.random.normal(k_x, (B, T, FEAT), dtype=jnp.float32)
    params = init_params(k_p, FEAT, HIDDEN, OUT)

    out = jax.block_until_ready(affective_ec_forward(x, params))
    ref = reference_forward(x, params)

    assert out.shape == (B, OUT)
    assert jnp.allclose(out, ref, atol=1e-5, rtol=1e-5), (out, ref)
    print("KERNEL_OK")
</pallas_src>

<mosaic_0001>
module attributes {stable_mosaic.version = 11 : i64} {
  func.func @gru_last_linear_sigmoid_kernel(%arg0: memref<8x2x16xf32, #tpu.memory_space<vmem>>, %arg1: memref<3x16x32xf32, #tpu.memory_space<vmem>>, %arg2: memref<3x32x32xf32, #tpu.memory_space<vmem>>, %arg3: memref<3x1x32xf32, #tpu.memory_space<vmem>>, %arg4: memref<1x32xf32, #tpu.memory_space<vmem>>, %arg5: memref<32x8xf32, #tpu.memory_space<vmem>>, %arg6: memref<1x8xf32, #tpu.memory_space<vmem>>, %arg7: memref<2x8xf32, #tpu.memory_space<vmem>>) attributes {dimension_semantics = [], scalar_prefetch = 0 : i64, scratch_operands = 0 : i64, tpu.core_type = #tpu.core_type<tc>} {
    %c0 = arith.constant 0 : index
    %c0_0 = arith.constant 0 : index
    %c0_1 = arith.constant 0 : index
    %0 = vector.load %arg1[%c0, %c0_0, %c0_1] : memref<3x16x32xf32, #tpu.memory_space<vmem>>, vector<1x16x32xf32>
    %1 = vector.shape_cast %0 : vector<1x16x32xf32> to vector<16x32xf32>
    %c1 = arith.constant 1 : index
    %c0_2 = arith.constant 0 : index
    %c0_3 = arith.constant 0 : index
    %2 = vector.load %arg1[%c1, %c0_2, %c0_3] : memref<3x16x32xf32, #tpu.memory_space<vmem>>, vector<1x16x32xf32>
    %3 = vector.shape_cast %2 : vector<1x16x32xf32> to vector<16x32xf32>
    %c2 = arith.constant 2 : index
    %c0_4 = arith.constant 0 : index
    %c0_5 = arith.constant 0 : index
    %4 = vector.load %arg1[%c2, %c0_4, %c0_5] : memref<3x16x32xf32, #tpu.memory_space<vmem>>, vector<1x16x32xf32>
    %5 = vector.shape_cast %4 : vector<1x16x32xf32> to vector<16x32xf32>
    %c0_6 = arith.constant 0 : index
    %c0_7 = arith.constant 0 : index
    %c0_8 = arith.constant 0 : index
    %6 = vector.load %arg2[%c0_6, %c0_7, %c0_8] : memref<3x32x32xf32, #tpu.memory_space<vmem>>, vector<1x32x32xf32>
    %7 = vector.shape_cast %6 : vector<1x32x32xf32> to vector<32x32xf32>
    %c1_9 = arith.constant 1 : index
    %c0_10 = arith.constant 0 : index
    %c0_11 = arith.constant 0 : index
    %8 = vector.load %arg2[%c1_9, %c0_10, %c0_11] : memref<3x32x32xf32, #tpu.memory_space<vmem>>, vector<1x32x32xf32>
    %9 = vector.shape_cast %8 : vector<1x32x32xf32> to vector<32x32xf32>
    %c2_12 = arith.constant 2 : index
    %c0_13 = arith.constant 0 : index
    %c0_14 = arith.constant 0 : index
    %10 = vector.load %arg2[%c2_12, %c0_13, %c0_14] : memref<3x32x32xf32, #tpu.memory_space<vmem>>, vector<1x32x32xf32>
    %11 = vector.shape_cast %10 : vector<1x32x32xf32> to vector<32x32xf32>
    %c0_15 = arith.constant 0 : index
    %c0_16 = arith.constant 0 : index
    %c0_17 = arith.constant 0 : index
    %12 = vector.load %arg3[%c0_15, %c0_16, %c0_17] : memref<3x1x32xf32, #tpu.memory_space<vmem>>, vector<1x1x32xf32>
    %13 = vector.shape_cast %12 : vector<1x1x32xf32> to vector<1x32xf32>
    %14 = vector.shape_cast %13 : vector<1x32xf32> to vector<1x32xf32>
    %15 = vector.broadcast %14 : vector<1x32xf32> to vector<2x32xf32>
    %c1_18 = arith.constant 1 : index
    %c0_19 = arith.constant 0 : index
    %c0_20 = arith.constant 0 : index
    %16 = vector.load %arg3[%c1_18, %c0_19, %c0_20] : memref<3x1x32xf32, #tpu.memory_space<vmem>>, vector<1x1x32xf32>
    %17 = vector.shape_cast %16 : vector<1x1x32xf32> to vector<1x32xf32>
    %18 = vector.shape_cast %17 : vector<1x32xf32> to vector<1x32xf32>
    %19 = vector.broadcast %18 : vector<1x32xf32> to vector<2x32xf32>
    %c2_21 = arith.constant 2 : index
    %c0_22 = arith.constant 0 : index
    %c0_23 = arith.constant 0 : index
    %20 = vector.load %arg3[%c2_21, %c0_22, %c0_23] : memref<3x1x32xf32, #tpu.memory_space<vmem>>, vector<1x1x32xf32>
    %21 = vector.shape_cast %20 : vector<1x1x32xf32> to vector<1x32xf32>
    %22 = vector.shape_cast %21 : vector<1x32xf32> to vector<1x32xf32>
    %23 = vector.broadcast %22 : vector<1x32xf32> to vector<2x32xf32>
    %c0_24 = arith.constant 0 : index
    %c0_25 = arith.constant 0 : index
    %24 = vector.load %arg4[%c0_24, %c0_25] : memref<1x32xf32, #tpu.memory_space<vmem>>, vector<1x32xf32>
    %25 = vector.shape_cast %24 : vector<1x32xf32> to vector<1x32xf32>
    %26 = vector.broadcast %25 : vector<1x32xf32> to vector<2x32xf32>
    %c0_26 = arith.constant 0 : index
    %c0_27 = arith.constant 0 : index
    %c0_28 = arith.constant 0 : index
    %27 = vector.load %arg0[%c0_26, %c0_27, %c0_28] : memref<8x2x16xf32, #tpu.memory_space<vmem>>, vector<1x2x16xf32>
    %28 = vector.shape_cast %27 : vector<1x2x16xf32> to vector<2x16xf32>
    %cst = arith.constant dense<0.000000e+00> : vector<2x32xf32>
    %29 = tpu.matmul %28, %1, %cst {dimension_numbers = #tpu.dot_dimension_numbers<[1], [0], [0], [1], [0, 0, 1, 1], [], []>} : vector<2x16xf32>, vector<16x32xf32>, vector<2x32xf32> -> vector<2x32xf32>
    %30 = arith.addf %29, %15 : vector<2x32xf32>
    %31 = arith.negf %30 : vector<2x32xf32>
    %32 = math.exp %31 : vector<2x32xf32>
    %cst_29 = arith.constant 1.000000e+00 : f32
    %33 = vector.broadcast %cst_29 : f32 to vector<2x32xf32>
    %34 = arith.addf %33, %32 : vector<2x32xf32>
    %35 = arith.divf %33, %34 : vector<2x32xf32>
    %cst_30 = arith.constant dense<0.000000e+00> : vector<2x32xf32>
    %36 = tpu.matmul %28, %3, %cst_30 {dimension_numbers = #tpu.dot_dimension_numbers<[1], [0], [0], [1], [0, 0, 1, 1], [], []>} : vector<2x16xf32>, vector<16x32xf32>, vector<2x32xf32> -> vector<2x32xf32>
    %37 = arith.addf %36, %19 : vector<2x32xf32>
    %38 = arith.negf %37 : vector<2x32xf32>
    %39 = math.exp %38 : vector<2x32xf32>
    %cst_31 = arith.constant 1.000000e+00 : f32
    %40 = vector.broadcast %cst_31 : f32 to vector<2x32xf32>
    %41 = arith.addf %40, %39 : vector<2x32xf32>
    %42 = arith.divf %40, %41 : vector<2x32xf32>
    %cst_32 = arith.constant dense<0.000000e+00> : vector<2x32xf32>
    %43 = tpu.matmul %28, %5, %cst_32 {dimension_numbers = #tpu.dot_dimension_numbers<[1], [0], [0], [1], [0, 0, 1, 1], [], []>} : vector<2x16xf32>, vector<16x32xf32>, vector<2x32xf32> -> vector<2x32xf32>
    %44 = arith.addf %43, %23 : vector<2x32xf32>
    %45 = arith.mulf %35, %26 : vector<2x32xf32>
    %46 = arith.addf %44, %45 : vector<2x32xf32>
    %47 = math.tanh %46 : vector<2x32xf32>
    %cst_33 = arith.constant 1.000000e+00 : f32
    %48 = vector.broadcast %cst_33 : f32 to vector<2x32xf32>
    %49 = arith.subf %48, %42 : vector<2x32xf32>
    %50 = arith.mulf %49, %47 : vector<2x32xf32>
    %c1_34 = arith.constant 1 : index
    %c0_35 = arith.constant 0 : index
    %c0_36 = arith.constant 0 : index
    %51 = vector.load %arg0[%c1_34, %c0_35, %c0_36] : memref<8x2x16xf32, #tpu.memory_space<vmem>>, vector<1x2x16xf32>
    %52 = vector.shape_cast %51 : vector<1x2x16xf32> to vector<2x16xf32>
    %cst_37 = arith.constant dense<0.000000e+00> : vector<2x32xf32>
    %53 = tpu.matmul %52, %1, %cst_37 {dimension_numbers = #tpu.dot_dimension_numbers<[1], [0], [0], [1], [0, 0, 1, 1], [], []>} : vector<2x16xf32>, vector<16x32xf32>, vector<2x32xf32> -> vector<2x32xf32>
    %54 = arith.addf %53, %15 : vector<2x32xf32>
    %cst_38 = arith.constant dense<0.000000e+00> : vector<2x32xf32>
    %55 = tpu.matmul %52, %3, %cst_38 {dimension_numbers = #tpu.dot_dimension_numbers<[1], [0], [0], [1], [0, 0, 1, 1], [], []>} : vector<2x16xf32>, vector<16x32xf32>, vector<2x32xf32> -> vector<2x32xf32>
    %56 = arith.addf %55, %19 : vector<2x32xf32>
    %cst_39 = arith.constant dense<0.000000e+00> : vector<2x32xf32>
    %57 = tpu.matmul %52, %5, %cst_39 {dimension_numbers = #tpu.dot_dimension_numbers<[1], [0], [0], [1], [0, 0, 1, 1], [], []>} : vector<2x16xf32>, vector<16x32xf32>, vector<2x32xf32> -> vector<2x32xf32>
    %58 = arith.addf %57, %23 : vector<2x32xf32>
    %cst_40 = arith.constant dense<0.000000e+00> : vector<2x32xf32>
    %59 = tpu.matmul %50, %7, %cst_40 {dimension_numbers = #tpu.dot_dimension_numbers<[1], [0], [0], [1], [0, 0, 1, 1], [], []>} : vector<2x32xf32>, vector<32x32xf32>, vector<2x32xf32> -> vector<2x32xf32>
    %cst_41 = arith.constant dense<0.000000e+00> : vector<2x32xf32>
    %60 = tpu.matmul %50, %9, %cst_41 {dimension_numbers = #tpu.dot_dimension_numbers<[1], [0], [0], [1], [0, 0, 1, 1], [], []>} : vector<2x32xf32>, vector<32x32xf32>, vector<2x32xf32> -> vector<2x32xf32>
    %cst_42 = arith.constant dense<0.000000e+00> : vector<2x32xf32>
    %61 = tpu.matmul %50, %11, %cst_42 {dimension_numbers = #tpu.dot_dimension_numbers<[1], [0], [0], [1], [0, 0, 1, 1], [], []>} : vector<2x32xf32>, vector<32x32xf32>, vector<2x32xf32> -> vector<2x32xf32>
    %62 = arith.addf %54, %59 : vector<2x32xf32>
    %63 = arith.negf %62 : vector<2x32xf32>
    %64 = math.exp %63 : vector<2x32xf32>
    %cst_43 = arith.constant 1.000000e+00 : f32
    %65 = vector.broadcast %cst_43 : f32 to vector<2x32xf32>
    %66 = arith.addf %65, %64 : vector<2x32xf32>
    %67 = arith.divf %65, %66 : vector<2x32xf32>
    %68 = arith.addf %56, %60 : vector<2x32xf32>
    %69 = arith.negf %68 : vector<2x32xf32>
    %70 = math.exp %69 : vector<2x32xf32>
    %cst_44 = arith.constant 1.000000e+00 : f32
    %71 = vector.broadcast %cst_44 : f32 to vector<2x32xf32>
    %72 = arith.addf %71, %70 : vector<2x32xf32>
    %73 = arith.divf %71, %72 : vector<2x32xf32>
    %74 = arith.addf %61, %26 : vector<2x32xf32>
    %75 = arith.mulf %67, %74 : vector<2x32xf32>
    %76 = arith.addf %58, %75 : vector<2x32xf32>
    %77 = math.tanh %76 : vector<2x32xf32>
    %cst_45 = arith.constant 1.000000e+00 : f32
    %78 = vector.broadcast %cst_45 : f32 to vector<2x32xf32>
    %79 = arith.subf %78, %73 : vector<2x32xf32>
    %80 = arith.mulf %79, %77 : vector<2x32xf32>
    %81 = arith.mulf %73, %50 : vector<2x32xf32>
    %82 = arith.addf %80, %81 : vector<2x32xf32>
    %c2_46 = arith.constant 2 : index
    %c0_47 = arith.constant 0 : index
    %c0_48 = arith.constant 0 : index
    %83 = vector.load %arg0[%c2_46, %c0_47, %c0_48] : memref<8x2x16xf32, #tpu.memory_space<vmem>>, vector<1x2x16xf32>
    %84 = vector.shape_cast %83 : vector<1x2x16xf32> to vector<2x16xf32>
    %cst_49 = arith.constant dense<0.000000e+00> : vector<2x32xf32>
    %85 = tpu.matmul %84, %1, %cst_49 {dimension_numbers = #tpu.dot_dimension_numbers<[1], [0], [0], [1], [0, 0, 1, 1], [], []>} : vector<2x16xf32>, vector<16x32xf32>, vector<2x32xf32> -> vector<2x32xf32>
    %86 = arith.addf %85, %15 : vector<2x32xf32>
    %cst_50 = arith.constant dense<0.000000e+00> : vector<2x32xf32>
    %87 = tpu.matmul %84, %3, %cst_50 {dimension_numbers = #tpu.dot_dimension_numbers<[1], [0], [0], [1], [0, 0, 1, 1], [], []>} : vector<2x16xf32>, vector<16x32xf32>, vector<2x32xf32> -> vector<2x32xf32>
    %88 = arith.addf %87, %19 : vector<2x32xf32>
    %cst_51 = arith.constant dense<0.000000e+00> : vector<2x32xf32>
    %89 = tpu.matmul %84, %5, %cst_51 {dimension_numbers = #tpu.dot_dimension_numbers<[1], [0], [0], [1], [0, 0, 1, 1], [], []>} : vector<2x16xf32>, vector<16x32xf32>, vector<2x32xf32> -> vector<2x32xf32>
    %90 = arith.addf %89, %23 : vector<2x32xf32>
    %cst_52 = arith.constant dense<0.000000e+00> : vector<2x32xf32>
    %91 = tpu.matmul %82, %7, %cst_52 {dimension_numbers = #tpu.dot_dimension_numbers<[1], [0], [0], [1], [0, 0, 1, 1], [], []>} : vector<2x32xf32>, vector<32x32xf32>, vector<2x32xf32> -> vector<2x32xf32>
    %cst_53 = arith.constant dense<0.000000e+00> : vector<2x32xf32>
    %92 = tpu.matmul %82, %9, %cst_53 {dimension_numbers = #tpu.dot_dimension_numbers<[1], [0], [0], [1], [0, 0, 1, 1], [], []>} : vector<2x32xf32>, vector<32x32xf32>, vector<2x32xf32> -> vector<2x32xf32>
    %cst_54 = arith.constant dense<0.000000e+00> : vector<2x32xf32>
    %93 = tpu.matmul %82, %11, %cst_54 {dimension_numbers = #tpu.dot_dimension_numbers<[1], [0], [0], [1], [0, 0, 1, 1], [], []>} : vector<2x32xf32>, vector<32x32xf32>, vector<2x32xf32> -> vector<2x32xf32>
    %94 = arith.addf %86, %91 : vector<2x32xf32>
    %95 = arith.negf %94 : vector<2x32xf32>
    %96 = math.exp %95 : vector<2x32xf32>
    %cst_55 = arith.constant 1.000000e+00 : f32
    %97 = vector.broadcast %cst_55 : f32 to vector<2x32xf32>
    %98 = arith.addf %97, %96 : vector<2x32xf32>
    %99 = arith.divf %97, %98 : vector<2x32xf32>
    %100 = arith.addf %88, %92 : vector<2x32xf32>
    %101 = arith.negf %100 : vector<2x32xf32>
    %102 = math.exp %101 : vector<2x32xf32>
    %cst_56 = arith.constant 1.000000e+00 : f32
    %103 = vector.broadcast %cst_56 : f32 to vector<2x32xf32>
    %104 = arith.addf %103, %102 : vector<2x32xf32>
    %105 = arith.divf %103, %104 : vector<2x32xf32>
    %106 = arith.addf %93, %26 : vector<2x32xf32>
    %107 = arith.mulf %99, %106 : vector<2x32xf32>
    %108 = arith.addf %90, %107 : vector<2x32xf32>
    %109 = math.tanh %108 : vector<2x32xf32>
    %cst_57 = arith.constant 1.000000e+00 : f32
    %110 = vector.broadcast %cst_57 : f32 to vector<2x32xf32>
    %111 = arith.subf %110, %105 : vector<2x32xf32>
    %112 = arith.mulf %111, %109 : vector<2x32xf32>
    %113 = arith.mulf %105, %82 : vector<2x32xf32>
    %114 = arith.addf %112, %113 : vector<2x32xf32>
    %c3 = arith.constant 3 : index
    %c0_58 = arith.constant 0 : index
    %c0_59 = arith.constant 0 : index
    %115 = vector.load %arg0[%c3, %c0_58, %c0_59] : memref<8x2x16xf32, #tpu.memory_space<vmem>>, vector<1x2x16xf32>
    %116 = vector.shape_cast %115 : vector<1x2x16xf32> to vector<2x16xf32>
    %cst_60 = arith.constant dense<0.000000e+00> : vector<2x32xf32>
    %117 = tpu.matmul %116, %1, %cst_60 {dimension_numbers = #tpu.dot_dimension_numbers<[1], [0], [0], [1], [0, 0, 1, 1], [], []>} : vector<2x16xf32>, vector<16x32xf32>, vector<2x32xf32> -> vector<2x32xf32>
    %118 = arith.addf %117, %15 : vector<2x32xf32>
    %cst_61 = arith.constant dense<0.000000e+00> : vector<2x32xf32>
    %119 = tpu.matmul %116, %3, %cst_61 {dimension_numbers = #tpu.dot_dimension_numbers<[1], [0], [0], [1], [0, 0, 1, 1], [], []>} : vector<2x16xf32>, vector<16x32xf32>, vector<2x32xf32> -> vector<2x32xf32>
    %120 = arith.addf %119, %19 : vector<2x32xf32>
    %cst_62 = arith.constant dense<0.000000e+00> : vector<2x32xf32>
    %121 = tpu.matmul %116, %5, %cst_62 {dimension_numbers = #tpu.dot_dimension_numbers<[1], [0], [0], [1], [0, 0, 1, 1], [], []>} : vector<2x16xf32>, vector<16x32xf32>, vector<2x32xf32> -> vector<2x32xf32>
    %122 = arith.addf %121, %23 : vector<2x32xf32>
    %cst_63 = arith.constant dense<0.000000e+00> : vector<2x32xf32>
    %123 = tpu.matmul %114, %7, %cst_63 {dimension_numbers = #tpu.dot_dimension_numbers<[1], [0], [0], [1], [0, 0, 1, 1], [], []>} : vector<2x32xf32>, vector<32x32xf32>, vector<2x32xf32> -> vector<2x32xf32>
    %cst_64 = arith.constant dense<0.000000e+00> : vector<2x32xf32>
    %124 = tpu.matmul %114, %9, %cst_64 {dimension_numbers = #tpu.dot_dimension_numbers<[1], [0], [0], [1], [0, 0, 1, 1], [], []>} : vector<2x32xf32>, vector<32x32xf32>, vector<2x32xf32> -> vector<2x32xf32>
    %cst_65 = arith.constant dense<0.000000e+00> : vector<2x32xf32>
    %125 = tpu.matmul %114, %11, %cst_65 {dimension_numbers = #tpu.dot_dimension_numbers<[1], [0], [0], [1], [0, 0, 1, 1], [], []>} : vector<2x32xf32>, vector<32x32xf32>, vector<2x32xf32> -> vector<2x32xf32>
    %126 = arith.addf %118, %123 : vector<2x32xf32>
    %127 = arith.negf %126 : vector<2x32xf32>
    %128 = math.exp %127 : vector<2x32xf32>
    %cst_66 = arith.constant 1.000000e+00 : f32
    %129 = vector.broadcast %cst_66 : f32 to vector<2x32xf32>
    %130 = arith.addf %129, %128 : vector<2x32xf32>
    %131 = arith.divf %129, %130 : vector<2x32xf32>
    %132 = arith.addf %120, %124 : vector<2x32xf32>
    %133 = arith.negf %132 : vector<2x32xf32>
    %134 = math.exp %133 : vector<2x32xf32>
    %cst_67 = arith.constant 1.000000e+00 : f32
    %135 = vector.broadcast %cst_67 : f32 to vector<2x32xf32>
    %136 = arith.addf %135, %134 : vector<2x32xf32>
    %137 = arith.divf %135, %136 : vector<2x32xf32>
    %138 = arith.addf %125, %26 : vector<2x32xf32>
    %139 = arith.mulf %131, %138 : vector<2x32xf32>
    %140 = arith.addf %122, %139 : vector<2x32xf32>
    %141 = math.tanh %140 : vector<2x32xf32>
    %cst_68 = arith.constant 1.000000e+00 : f32
    %142 = vector.broadcast %cst_68 : f32 to vector<2x32xf32>
    %143 = arith.subf %142, %137 : vector<2x32xf32>
    %144 = arith.mulf %143, %141 : vector<2x32xf32>
    %145 = arith.mulf %137, %114 : vector<2x32xf32>
    %146 = arith.addf %144, %145 : vector<2x32xf32>
    %c4 = arith.constant 4 : index
    %c0_69 = arith.constant 0 : index
    %c0_70 = arith.constant 0 : index
    %147 = vector.load %arg0[%c4, %c0_69, %c0_70] : memref<8x2x16xf32, #tpu.memory_space<vmem>>, vector<1x2x16xf32>
    %148 = vector.shape_cast %147 : vector<1x2x16xf32> to vector<2x16xf32>
    %cst_71 = arith.constant dense<0.000000e+00> : vector<2x32xf32>
    %149 = tpu.matmul %148, %1, %cst_71 {dimension_numbers = #tpu.dot_dimension_numbers<[1], [0], [0], [1], [0, 0, 1, 1], [], []>} : vector<2x16xf32>, vector<16x32xf32>, vector<2x32xf32> -> vector<2x32xf32>
    %150 = arith.addf %149, %15 : vector<2x32xf32>
    %cst_72 = arith.constant dense<0.000000e+00> : vector<2x32xf32>
    %151 = tpu.matmul %148, %3, %cst_72 {dimension_numbers = #tpu.dot_dimension_numbers<[1], [0], [0], [1], [0, 0, 1, 1], [], []>} : vector<2x16xf32>, vector<16x32xf32>, vector<2x32xf32> -> vector<2x32xf32>
    %152 = arith.addf %151, %19 : vector<2x32xf32>
    %cst_73 = arith.constant dense<0.000000e+00> : vector<2x32xf32>
    %153 = tpu.matmul %148, %5, %cst_73 {dimension_numbers = #tpu.dot_dimension_numbers<[1], [0], [0], [1], [0, 0, 1, 1], [], []>} : vector<2x16xf32>, vector<16x32xf32>, vector<2x32xf32> -> vector<2x32xf32>
    %154 = arith.addf %153, %23 : vector<2x32xf32>
    %cst_74 = arith.constant dense<0.000000e+00> : vector<2x32xf32>
    %155 = tpu.matmul %146, %7, %cst_74 {dimension_numbers = #tpu.dot_dimension_numbers<[1], [0], [0], [1], [0, 0, 1, 1], [], []>} : vector<2x32xf32>, vector<32x32xf32>, vector<2x32xf32> -> vector<2x32xf32>
    %cst_75 = arith.constant dense<0.000000e+00> : vector<2x32xf32>
    %156 = tpu.matmul %146, %9, %cst_75 {dimension_numbers = #tpu.dot_dimension_numbers<[1], [0], [0], [1], [0, 0, 1, 1], [], []>} : vector<2x32xf32>, vector<32x32xf32>, vector<2x32xf32> -> vector<2x32xf32>
    %cst_76 = arith.constant dense<0.000000e+00> : vector<2x32xf32>
    %157 = tpu.matmul %146, %11, %cst_76 {dimension_numbers = #tpu.dot_dimension_numbers<[1], [0], [0], [1], [0, 0, 1, 1], [], []>} : vector<2x32xf32>, vector<32x32xf32>, vector<2x32xf32> -> vector<2x32xf32>
    %158 = arith.addf %150, %155 : vector<2x32xf32>
    %159 = arith.negf %158 : vector<2x32xf32>
    %160 = math.exp %159 : vector<2x32xf32>
    %cst_77 = arith.constant 1.000000e+00 : f32
    %161 = vector.broadcast %cst_77 : f32 to vector<2x32xf32>
    %162 = arith.addf %161, %160 : vector<2x32xf32>
    %163 = arith.divf %161, %162 : vector<2x32xf32>
    %164 = arith.addf %152, %156 : vector<2x32xf32>
    %165 = arith.negf %164 : vector<2x32xf32>
    %166 = math.exp %165 : vector<2x32xf32>
    %cst_78 = arith.constant 1.000000e+00 : f32
    %167 = vector.broadcast %cst_78 : f32 to vector<2x32xf32>
    %168 = arith.addf %167, %166 : vector<2x32xf32>
    %169 = arith.divf %167, %168 : vector<2x32xf32>
    %170 = arith.addf %157, %26 : vector<2x32xf32>
    %171 = arith.mulf %163, %170 : vector<2x32xf32>
    %172 = arith.addf %154, %171 : vector<2x32xf32>
    %173 = math.tanh %172 : vector<2x32xf32>
    %cst_79 = arith.constant 1.000000e+00 : f32
    %174 = vector.broadcast %cst_79 : f32 to vector<2x32xf32>
    %175 = arith.subf %174, %169 : vector<2x32xf32>
    %176 = arith.mulf %175, %173 : vector<2x32xf32>
    %177 = arith.mulf %169, %146 : vector<2x32xf32>
    %178 = arith.addf %176, %177 : vector<2x32xf32>
    %c5 = arith.constant 5 : index
    %c0_80 = arith.constant 0 : index
    %c0_81 = arith.constant 0 : index
    %179 = vector.load %arg0[%c5, %c0_80, %c0_81] : memref<8x2x16xf32, #tpu.memory_space<vmem>>, vector<1x2x16xf32>
    %180 = vector.shape_cast %179 : vector<1x2x16xf32> to vector<2x16xf32>
    %cst_82 = arith.constant dense<0.000000e+00> : vector<2x32xf32>
    %181 = tpu.matmul %180, %1, %cst_82 {dimension_numbers = #tpu.dot_dimension_numbers<[1], [0], [0], [1], [0, 0, 1, 1], [], []>} : vector<2x16xf32>, vector<16x32xf32>, vector<2x32xf32> -> vector<2x32xf32>
    %182 = arith.addf %181, %15 : vector<2x32xf32>
    %cst_83 = arith.constant dense<0.000000e+00> : vector<2x32xf32>
    %183 = tpu.matmul %180, %3, %cst_83 {dimension_numbers = #tpu.dot_dimension_numbers<[1], [0], [0], [1], [0, 0, 1, 1], [], []>} : vector<2x16xf32>, vector<16x32xf32>, vector<2x32xf32> -> vector<2x32xf32>
    %184 = arith.addf %183, %19 : vector<2x32xf32>
    %cst_84 = arith.constant dense<0.000000e+00> : vector<2x32xf32>
    %185 = tpu.matmul %180, %5, %cst_84 {dimension_numbers = #tpu.dot_dimension_numbers<[1], [0], [0], [1], [0, 0, 1, 1], [], []>} : vector<2x16xf32>, vector<16x32xf32>, vector<2x32xf32> -> vector<2x32xf32>
    %186 = arith.addf %185, %23 : vector<2x32xf32>
    %cst_85 = arith.constant dense<0.000000e+00> : vector<2x32xf32>
    %187 = tpu.matmul %178, %7, %cst_85 {dimension_numbers = #tpu.dot_dimension_numbers<[1], [0], [0], [1], [0, 0, 1, 1], [], []>} : vector<2x32xf32>, vector<32x32xf32>, vector<2x32xf32> -> vector<2x32xf32>
    %cst_86 = arith.constant dense<0.000000e+00> : vector<2x32xf32>
    %188 = tpu.matmul %178, %9, %cst_86 {dimension_numbers = #tpu.dot_dimension_numbers<[1], [0], [0], [1], [0, 0, 1, 1], [], []>} : vector<2x32xf32>, vector<32x32xf32>, vector<2x32xf32> -> vector<2x32xf32>
    %cst_87 = arith.constant dense<0.000000e+00> : vector<2x32xf32>
    %189 = tpu.matmul %178, %11, %cst_87 {dimension_numbers = #tpu.dot_dimension_numbers<[1], [0], [0], [1], [0, 0, 1, 1], [], []>} : vector<2x32xf32>, vector<32x32xf32>, vector<2x32xf32> -> vector<2x32xf32>
    %190 = arith.addf %182, %187 : vector<2x32xf32>
    %191 = arith.negf %190 : vector<2x32xf32>
    %192 = math.exp %191 : vector<2x32xf32>
    %cst_88 = arith.constant 1.000000e+00 : f32
    %193 = vector.broadcast %cst_88 : f32 to vector<2x32xf32>
    %194 = arith.addf %193, %192 : vector<2x32xf32>
    %195 = arith.divf %193, %194 : vector<2x32xf32>
    %196 = arith.addf %184, %188 : vector<2x32xf32>
    %197 = arith.negf %196 : vector<2x32xf32>
    %198 = math.exp %197 : vector<2x32xf32>
    %cst_89 = arith.constant 1.000000e+00 : f32
    %199 = vector.broadcast %cst_89 : f32 to vector<2x32xf32>
    %200 = arith.addf %199, %198 : vector<2x32xf32>
    %201 = arith.divf %199, %200 : vector<2x32xf32>
    %202 = arith.addf %189, %26 : vector<2x32xf32>
    %203 = arith.mulf %195, %202 : vector<2x32xf32>
    %204 = arith.addf %186, %203 : vector<2x32xf32>
    %205 = math.tanh %204 : vector<2x32xf32>
    %cst_90 = arith.constant 1.000000e+00 : f32
    %206 = vector.broadcast %cst_90 : f32 to vector<2x32xf32>
    %207 = arith.subf %206, %201 : vector<2x32xf32>
    %208 = arith.mulf %207, %205 : vector<2x32xf32>
    %209 = arith.mulf %201, %178 : vector<2x32xf32>
    %210 = arith.addf %208, %209 : vector<2x32xf32>
    %c6 = arith.constant 6 : index
    %c0_91 = arith.constant 0 : index
    %c0_92 = arith.constant 0 : index
    %211 = vector.load %arg0[%c6, %c0_91, %c0_92] : memref<8x2x16xf32, #tpu.memory_space<vmem>>, vector<1x2x16xf32>
    %212 = vector.shape_cast %211 : vector<1x2x16xf32> to vector<2x16xf32>
    %cst_93 = arith.constant dense<0.000000e+00> : vector<2x32xf32>
    %213 = tpu.matmul %212, %1, %cst_93 {dimension_numbers = #tpu.dot_dimension_numbers<[1], [0], [0], [1], [0, 0, 1, 1], [], []>} : vector<2x16xf32>, vector<16x32xf32>, vector<2x32xf32> -> vector<2x32xf32>
    %214 = arith.addf %213, %15 : vector<2x32xf32>
    %cst_94 = arith.constant dense<0.000000e+00> : vector<2x32xf32>
    %215 = tpu.matmul %212, %3, %cst_94 {dimension_numbers = #tpu.dot_dimension_numbers<[1], [0], [0], [1], [0, 0, 1, 1], [], []>} : vector<2x16xf32>, vector<16x32xf32>, vector<2x32xf32> -> vector<2x32xf32>
    %216 = arith.addf %215, %19 : vector<2x32xf32>
    %cst_95 = arith.constant dense<0.000000e+00> : vector<2x32xf32>
    %217 = tpu.matmul %212, %5, %cst_95 {dimension_numbers = #tpu.dot_dimension_numbers<[1], [0], [0], [1], [0, 0, 1, 1], [], []>} : vector<2x16xf32>, vector<16x32xf32>, vector<2x32xf32> -> vector<2x32xf32>
    %218 = arith.addf %217, %23 : vector<2x32xf32>
    %cst_96 = arith.constant dense<0.000000e+00> : vector<2x32xf32>
    %219 = tpu.matmul %210, %7, %cst_96 {dimension_numbers = #tpu.dot_dimension_numbers<[1], [0], [0], [1], [0, 0, 1, 1], [], []>} : vector<2x32xf32>, vector<32x32xf32>, vector<2x32xf32> -> vector<2x32xf32>
    %cst_97 = arith.constant dense<0.000000e+00> : vector<2x32xf32>
    %220 = tpu.matmul %210, %9, %cst_97 {dimension_numbers = #tpu.dot_dimension_numbers<[1], [0], [0], [1], [0, 0, 1, 1], [], []>} : vector<2x32xf32>, vector<32x32xf32>, vector<2x32xf32> -> vector<2x32xf32>
    %cst_98 = arith.constant dense<0.000000e+00> : vector<2x32xf32>
    %221 = tpu.matmul %210, %11, %cst_98 {dimension_numbers = #tpu.dot_dimension_numbers<[1], [0], [0], [1], [0, 0, 1, 1], [], []>} : vector<2x32xf32>, vector<32x32xf32>, vector<2x32xf32> -> vector<2x32xf32>
    %222 = arith.addf %214, %219 : vector<2x32xf32>
    %223 = arith.negf %222 : vector<2x32xf32>
    %224 = math.exp %223 : vector<2x32xf32>
    %cst_99 = arith.constant 1.000000e+00 : f32
    %225 = vector.broadcast %cst_99 : f32 to vector<2x32xf32>
    %226 = arith.addf %225, %224 : vector<2x32xf32>
    %227 = arith.divf %225, %226 : vector<2x32xf32>
    %228 = arith.addf %216, %220 : vector<2x32xf32>
    %229 = arith.negf %228 : vector<2x32xf32>
    %230 = math.exp %229 : vector<2x32xf32>
    %cst_100 = arith.constant 1.000000e+00 : f32
    %231 = vector.broadcast %cst_100 : f32 to vector<2x32xf32>
    %232 = arith.addf %231, %230 : vector<2x32xf32>
    %233 = arith.divf %231, %232 : vector<2x32xf32>
    %234 = arith.addf %221, %26 : vector<2x32xf32>
    %235 = arith.mulf %227, %234 : vector<2x32xf32>
    %236 = arith.addf %218, %235 : vector<2x32xf32>
    %237 = math.tanh %236 : vector<2x32xf32>
    %cst_101 = arith.constant 1.000000e+00 : f32
    %238 = vector.broadcast %cst_101 : f32 to vector<2x32xf32>
    %239 = arith.subf %238, %233 : vector<2x32xf32>
    %240 = arith.mulf %239, %237 : vector<2x32xf32>
    %241 = arith.mulf %233, %210 : vector<2x32xf32>
    %242 = arith.addf %240, %241 : vector<2x32xf32>
    %c7 = arith.constant 7 : index
    %c0_102 = arith.constant 0 : index
    %c0_103 = arith.constant 0 : index
    %243 = vector.load %arg0[%c7, %c0_102, %c0_103] : memref<8x2x16xf32, #tpu.memory_space<vmem>>, vector<1x2x16xf32>
    %244 = vector.shape_cast %243 : vector<1x2x16xf32> to vector<2x16xf32>
    %cst_104 = arith.constant dense<0.000000e+00> : vector<2x32xf32>
    %245 = tpu.matmul %244, %1, %cst_104 {dimension_numbers = #tpu.dot_dimension_numbers<[1], [0], [0], [1], [0, 0, 1, 1], [], []>} : vector<2x16xf32>, vector<16x32xf32>, vector<2x32xf32> -> vector<2x32xf32>
    %246 = arith.addf %245, %15 : vector<2x32xf32>
    %cst_105 = arith.constant dense<0.000000e+00> : vector<2x32xf32>
    %247 = tpu.matmul %244, %3, %cst_105 {dimension_numbers = #tpu.dot_dimension_numbers<[1], [0], [0], [1], [0, 0, 1, 1], [], []>} : vector<2x16xf32>, vector<16x32xf32>, vector<2x32xf32> -> vector<2x32xf32>
    %248 = arith.addf %247, %19 : vector<2x32xf32>
    %cst_106 = arith.constant dense<0.000000e+00> : vector<2x32xf32>
    %249 = tpu.matmul %244, %5, %cst_106 {dimension_numbers = #tpu.dot_dimension_numbers<[1], [0], [0], [1], [0, 0, 1, 1], [], []>} : vector<2x16xf32>, vector<16x32xf32>, vector<2x32xf32> -> vector<2x32xf32>
    %250 = arith.addf %249, %23 : vector<2x32xf32>
    %cst_107 = arith.constant dense<0.000000e+00> : vector<2x32xf32>
    %251 = tpu.matmul %242, %7, %cst_107 {dimension_numbers = #tpu.dot_dimension_numbers<[1], [0], [0], [1], [0, 0, 1, 1], [], []>} : vector<2x32xf32>, vector<32x32xf32>, vector<2x32xf32> -> vector<2x32xf32>
    %cst_108 = arith.constant dense<0.000000e+00> : vector<2x32xf32>
    %252 = tpu.matmul %242, %9, %cst_108 {dimension_numbers = #tpu.dot_dimension_numbers<[1], [0], [0], [1], [0, 0, 1, 1], [], []>} : vector<2x32xf32>, vector<32x32xf32>, vector<2x32xf32> -> vector<2x32xf32>
    %cst_109 = arith.constant dense<0.000000e+00> : vector<2x32xf32>
    %253 = tpu.matmul %242, %11, %cst_109 {dimension_numbers = #tpu.dot_dimension_numbers<[1], [0], [0], [1], [0, 0, 1, 1], [], []>} : vector<2x32xf32>, vector<32x32xf32>, vector<2x32xf32> -> vector<2x32xf32>
    %254 = arith.addf %246, %251 : vector<2x32xf32>
    %255 = arith.negf %254 : vector<2x32xf32>
    %256 = math.exp %255 : vector<2x32xf32>
    %cst_110 = arith.constant 1.000000e+00 : f32
    %257 = vector.broadcast %cst_110 : f32 to vector<2x32xf32>
    %258 = arith.addf %257, %256 : vector<2x32xf32>
    %259 = arith.divf %257, %258 : vector<2x32xf32>
    %260 = arith.addf %248, %252 : vector<2x32xf32>
    %261 = arith.negf %260 : vector<2x32xf32>
    %262 = math.exp %261 : vector<2x32xf32>
    %cst_111 = arith.constant 1.000000e+00 : f32
    %263 = vector.broadcast %cst_111 : f32 to vector<2x32xf32>
    %264 = arith.addf %263, %262 : vector<2x32xf32>
    %265 = arith.divf %263, %264 : vector<2x32xf32>
    %266 = arith.addf %253, %26 : vector<2x32xf32>
    %267 = arith.mulf %259, %266 : vector<2x32xf32>
    %268 = arith.addf %250, %267 : vector<2x32xf32>
    %269 = math.tanh %268 : vector<2x32xf32>
    %cst_112 = arith.constant 1.000000e+00 : f32
    %270 = vector.broadcast %cst_112 : f32 to vector<2x32xf32>
    %271 = arith.subf %270, %265 : vector<2x32xf32>
    %272 = arith.mulf %271, %269 : vector<2x32xf32>
    %273 = arith.mulf %265, %242 : vector<2x32xf32>
    %274 = arith.addf %272, %273 : vector<2x32xf32>
    %c0_113 = arith.constant 0 : index
    %c0_114 = arith.constant 0 : index
    %275 = vector.load %arg5[%c0_113, %c0_114] : memref<32x8xf32, #tpu.memory_space<vmem>>, vector<32x8xf32>
    %cst_115 = arith.constant dense<0.000000e+00> : vector<2x8xf32>
    %276 = tpu.matmul %274, %275, %cst_115 {dimension_numbers = #tpu.dot_dimension_numbers<[1], [0], [0], [1], [0, 0, 1, 1], [], []>} : vector<2x32xf32>, vector<32x8xf32>, vector<2x8xf32> -> vector<2x8xf32>
    %c0_116 = arith.constant 0 : index
    %c0_117 = arith.constant 0 : index
    %277 = vector.load %arg6[%c0_116, %c0_117] : memref<1x8xf32, #tpu.memory_space<vmem>>, vector<1x8xf32>
    %278 = vector.broadcast %277 : vector<1x8xf32> to vector<2x8xf32>
    %279 = arith.addf %276, %278 : vector<2x8xf32>
    %280 = arith.negf %279 : vector<2x8xf32>
    %281 = math.exp %280 : vector<2x8xf32>
    %cst_118 = arith.constant 1.000000e+00 : f32
    %282 = vector.broadcast %cst_118 : f32 to vector<2x8xf32>
    %283 = arith.addf %282, %281 : vector<2x8xf32>
    %284 = arith.divf %282, %283 : vector<2x8xf32>
    %c0_119 = arith.constant 0 : index
    %c0_120 = arith.constant 0 : index
    %285 = vector.load %arg7[%c0_119, %c0_120] : memref<2x8xf32, #tpu.memory_space<vmem>>, vector<2x8xf32>
    tpu.vector_store %arg7[%c0_119, %c0_120], %284 {strides = array<i32>} : memref<2x8xf32, #tpu.memory_space<vmem>>, vector<2x8xf32>,
    return
  }
}

</mosaic_0001>

<bundles_post_ra>
// kernel: affective_ec_forward.1
= control target key start
LH: loop header
LB: loop body
LE: loop exit
PB: predicated region body
PF: predicated region fallthrough
CT: control target
= control target key end

     0   :  { %v4600_v2 = vmov 0.0|0.0   ;;  %vm4601_vm0 = vmmov 0   ;;  %v4602_v4 = vmov 0.0   ;;  %vm80_vm1 = vcmask 130048   ;;  %s5097_s0 = inlined_call_operand.vmem [shape: f32[8,2,16], index: 0, kind: input, shape index: {}]   ;;  %s5098_s1 = inlined_call_operand.vmem [shape: f32[3,16,32], index: 1, kind: input, shape index: {}]   ;;  %s5099_s2 = inlined_call_operand.vmem [shape: f32[3,32,32], index: 2, kind: input, shape index: {}]   ;;  %s5100_s3 = inlined_call_operand.vmem [shape: f32[3,1,32], index: 3, kind: input, shape index: {}]   ;;  %s5101_s4 = inlined_call_operand.vmem [shape: f32[1,32], index: 4, kind: input, shape index: {}]   ;;  %s5102_s5 = inlined_call_operand.vmem [shape: f32[32,8], index: 5, kind: input, shape index: {}]   ;;  %s5103_s6 = inlined_call_operand.vmem [shape: f32[1,8], index: 6, kind: input, shape index: {}]   ;;  %s5104_s7 = inlined_call_operand.hbm [shape: f32[2,8], index: 7, kind: output, shape index: {}]  }
   0x1   :  { %v27_v0 = vld [vmem:[%s5098_s1] sm:$0xff]  ;;  %v28_v1 = vld [vmem:[%s5098_s1 + $0x8] sm:$0xff]  ;;  %4242 = vmatprep.subr.bf16.mxu0 %v4600_v2  ;;  %3836 = vmatprep.mubr.msk.f32.mxu0 %vm4601_vm0, %v4602_v4  ;;  %v3561_v5 = vld [vmem:[%s5098_s1 + $0x10] sm:$0xff] }
   0x2   :  { %v4651_v3 = vpack.c.bf16 %v28_v1, %v27_v0  ;;  %v3562_v6 = vld [vmem:[%s5098_s1 + $0x18] sm:$0xff]  ;;  %4245 = vmatprep.subr.bf16.mxu1 %v4600_v2  ;;  %3843 = vmatprep.mubr.msk.f32.mxu1 %vm4601_vm0, %v4602_v4  ;;  %v3563_v8 = vld [vmem:[%s5098_s1 + $0x20] sm:$0xff]  ;;  %v3564_v9 = vld [vmem:[%s5098_s1 + $0x28] sm:$0xff] }
   0x3   :  { %v4662_v7 = vpack.c.bf16 %v3562_v6, %v3561_v5  ;;  %v79_v10 = vld [vmem:[%s5097_s0] sm:$0x3]  ;;  %v4676_v11 = vpack.c.bf16 %v3564_v9, %v3563_v8 }
   0x4   :  { %4244 = vmatpush3.bf16.msra.mxu0 %v4651_v3 }
   0x5   :  { %12 = vsyncpa [#allocation3], 0  ;;  %4247 = vmatpush3.bf16.msra.mxu1 %v4662_v7  ;;  %4248 = vmatprep.subr.bf16.mxu0 %v4600_v2  ;;  %v3584_v12 = vld [vmem:[%s5097_s0 + $0x2] sm:$0x3]  ;;  %v3566_v14 = vld [vmem:[%s5099_s2 + $0x28] sm:$0xff]  ;;  %vm526_vm2 = vcmask 261120  }
   0x6   :  { %4251 = vmatprep.subr.bf16.mxu1 %v4600_v2  ;;  %v3565_v13 = vld [vmem:[%s5099_s2 + $0x20] sm:$0xff]  ;;  %v36_v17 = vld [vmem:[%s5099_s2 + $0x8] sm:$0xff]  ;;  %v3567_v18 = vld [vmem:[%s5099_s2 + $0x30] sm:$0xff]  ;;  %s4603_s17 = smov [#allocation2]   ;;  %vm3545_vm3 = vcmask 58368  }
   0x7   :  { %3837 = vmatmul.mubr.msk.f32.vlgmr.msra.gmra.mrb[0].mxu0 %vm80_vm1, %v79_v10  ;;  %v4707_v15 = vpack.c.bf16 %v3566_v14, %v3565_v13  ;;  %v35_v16 = vld [vmem:[%s5099_s2] sm:$0xff]  ;;  %v3568_v20 = vld [vmem:[%s5099_s2 + $0x38] sm:$0xff]  ;;  %v37_v22 = vld [vmem:[%s5099_s2 + $0x10] sm:$0xff] }
   0x8   :  { %3844 = vmatmul.mubr.msk.f32.vlgmr.msra.gmra.mrb[0].mxu1 %vm80_vm1, %v79_v10  ;;  %4250 = vmatpush3.bf16.msra.mxu0 %v4676_v11  ;;  %v4721_v19 = vpack.c.bf16 %v36_v17, %v35_v16  ;;  %v4728_v21 = vpack.c.bf16 %v3568_v20, %v3567_v18  ;;  %v38_v23 = vld [vmem:[%s5099_s2 + $0x18] sm:$0xff]  ;;  %v4753_v25 = vld [vmem:[%s5100_s3] ss:$0 sm:$0xff]  ;;  %v4758_v26 = vld [vmem:[%s5100_s3 + $0x1] ss:$0 sm:$0xff] }
   0x9   :  { %3850 = vmatprep.mubr.msk.f32.mxu0 %vm4601_vm0, %v4602_v4  ;;  %4253 = vmatpush3.bf16.msra.mxu1 %v4651_v3  ;;  %v4741_v24 = vpack.c.bf16 %v38_v23, %v37_v22  ;;  %v4765_v41 = vld [vmem:[%s5100_s3 + $0x2] ss:$0 sm:$0xff]  ;;  %v4770_v42 = vld [vmem:[%s5101_s4] ss:$0 sm:$0xff]  ;;  %v3570_v50 = vld [vmem:[%s5099_s2 + $0x48] sm:$0xff]  ;;  %s3553_s3 = sshll.u32 %s4603_s17, 4  ;;  %s3554_s3 = int_to_ptr.vmem [resolvable:$true] %s3553_s3 }
   0xa   :  { %3857 = vmatprep.mubr.msk.f32.mxu1 %vm4601_vm0, %v4602_v4  ;;  %4254 = vmatprep.subr.bf16.mxu0 %v4600_v2  ;;  %v3569_v49 = vld [vmem:[%s5099_s2 + $0x40] sm:$0xff]  ;;  %v3571_v54 = vld [vmem:[%s5099_s2 + $0x50] sm:$0xff]  ;;  %v3572_v55 = vld [vmem:[%s5099_s2 + $0x58] sm:$0xff]  ;;  %s4576_s18 = scalar_lea.vmem %s3554_s3, 32  ;;  %p4581_p1 = scmp.lt.s32.totalorder %s3554_s3, %s3554_s3 }
   0xb   :  { %3851 = vmatmul.mubr.msk.f32.vlgmr.msra.gmra.mrb[2].mxu0 %vm80_vm1, %v79_v10  ;;  %4257 = vmatprep.subr.bf16.mxu1 %v4600_v2  ;;  %v4780_v52 = vpack.c.bf16 %v3570_v50, %v3569_v49  ;;  %v4795_v56 = vpack.c.bf16 %v3572_v55, %v3571_v54  ;;  %v3593_v59 = vld [vmem:[%s5097_s0 + $0x4] sm:$0x3]  ;;  %p4577_p0 = scmp.ne.s32.totalorder %s3554_s3, %s4576_s18  ;;  %p4582_p2 = scmp.lt.s32.totalorder %s4576_s18, %s4576_s18 }
   0xc   :  { %4256 = vmatpush3.bf16.msra.mxu0 %v4662_v7  ;;  %3864 = vmatprep.mubr.msk.f32.mxu0 %vm4601_vm0, %v4602_v4 }
   0xd   :  { %4266 = vmatprep.subr.bf16.mxu0 %v4600_v2  ;;  %3858 = vmatmul.mubr.msk.f32.vlgmr.msra.gmra.mrb[2].mxu1 %vm80_vm1, %v3584_v12  ;;  %p4583_p3 = por %p4582_p2, %p4581_p1 }
   0xe   :  { %4259 = vmatpush3.bf16.msra.mxu1 %v4676_v11  ;;  %3871 = vmatprep.mubr.msk.f32.mxu1 %vm4601_vm0, %v4602_v4 }
   0xf   :  { %3865 = vmatmul.mubr.msk.f32.vlgmr.msra.gmra.mrb[4].mxu0 %vm80_vm1, %v3584_v12  ;;  %4260 = vmatprep.subr.bf16.mxu1 %v4600_v2  ;;  %p4584_p4 = pnand %p4583_p3, %p4577_p0 }
  0x10   :  { %4268 = vmatpush3.bf16.msra.mxu0 %v4707_v15  ;;  %3893 = vmatprep.mubr.msk.f32.mxu0 %vm4601_vm0, %v4602_v4 }
  0x11   :  { %4269 = vmatprep.subr.bf16.mxu0 %v4600_v2  ;;  %3872 = vmatmul.mubr.msk.f32.vlgmr.msra.gmra.mrb[4].mxu1 %vm80_vm1, %v3584_v12 }
  0x12   :  { %4262 = vmatpush3.bf16.msra.mxu1 %v4721_v19  ;;  %3882 = vmatprep.mubr.msk.f32.mxu1 %vm4601_vm0, %v4602_v4 }
  0x13   :  { %4263 = vmatprep.subr.bf16.mxu1 %v4600_v2 }
  0x14   :  { %4271 = vmatpush3.bf16.msra.mxu0 %v4728_v21 }
  0x15   :  { %4272 = vmatprep.subr.bf16.mxu0 %v4600_v2 }
  0x16   :  { %4265 = vmatpush3.bf16.msra.mxu1 %v4741_v24 }
  0x17   :  { %4278 = vmatprep.subr.bf16.mxu1 %v4600_v2 }
  0xda   :  { %v150_v27 = vpop.f32.mrb[0].mxu0 }
  0xdb   :  { %v151_v28 = vadd.f32 %v4753_v25, %v150_v27  ;;  %v3838_v29 = vpop.f32.mrb[1].mxu0  ;;  %v226_v30 = vpop.f32.mrb[0].mxu1 }
  0xdc   :  { %v227_v31 = vadd.f32 %v4758_v26, %v226_v30  ;;  %v3845_v32 = vpop.f32.mrb[1].mxu1 }
  0xdd   :  { %v3580_v33 = vmul.f32 -1.442695, %v151_v28 }
  0xde   :  { %v302_v34 = vpop.f32.mrb[2].mxu0  ;;  %v3582_v36 = vmul.f32 -1.442695, %v227_v31 }
  0xdf   :  { %4492 = vpow2.f32 %v3580_v33  ;;  %v3852_v35 = vpop.f32.mrb[3].mxu0  ;;  %v303_v43 = vadd.f32 %v4765_v41, %v302_v34  ;;  %v3602_v34 = vld [vmem:[%s5097_s0 + $0x6] sm:$0x3] }
  0xe0   :  { %4494 = vpow2.f32 %v3582_v36 }
  0xe4   :  { %v522_v57 = vpop.f32.mrb[4].mxu1 }
  0xe5   :  { %v3873_v58 = vpop.f32.mrb[5].mxu1  ;;  %v523_v18 = vadd.f32 %v4765_v41, %v522_v57 }
  0xe9   :  { %v4493_v37 = vpop.eup %4492 }
  0xea   :  { %v157_v38 = vadd.f32 1.0, %v4493_v37  ;;  %v4495_v39 = vpop.eup %4494 }
  0xeb   :  { %v233_v40 = vadd.f32 1.0, %v4495_v39 }
  0xec   :  { %4496 = vrcp.f32 %v157_v38 }
  0xed   :  { %4498 = vrcp.f32 %v233_v40 }
  0xf6   :  { %v4497_v44 = vpop.eup %4496 }
  0xf7   :  { %v306_v45 = vmul.f32 %v4497_v44, %v4770_v42  ;;  %v4499_v47 = vpop.eup %4498 }
  0xf8   :  { %v309_v48 = vsub.f32 1.0, %v4499_v47 }
  0xf9   :  { %v307_v46 = vadd.f32 %v306_v45, %v303_v43 }
  0xfb   :  { %4500 = vtanh.f32 %v307_v46 }
 0x105   :  { %v4501_v51 = vpop.eup %4500 }
 0x106   :  { %v4782_v53 = vmul.f32 %v4501_v51, %v309_v48 }
 0x108   :  { %3883 = vmatmul.mubr.msk.f32.vlgmr.msra.gmra.mrb[2].mxu1 %vm526_vm2, %v4782_v53  ;;  %3894 = vmatmul.mubr.msk.f32.vlgmr.msra.gmra.mrb[4].mxu0 %vm526_vm2, %v4782_v53 }
 0x109   :  { %4274 = vmatpush3.bf16.msra.mxu0 %v4780_v52  ;;  %3904 = vmatprep.mubr.msk.f32.mxu0 %vm4601_vm0, %v4602_v4 }
 0x10a   :  { %4275 = vmatprep.subr.bf16.mxu0 %v4600_v2  ;;  %4280 = vmatpush3.bf16.msra.mxu1 %v4651_v3 }
 0x10b   :  { %3911 = vmatprep.mubr.msk.f32.mxu1 %vm4601_vm0, %v4602_v4  ;;  %4281 = vmatprep.subr.bf16.mxu1 %v4600_v2 }
 0x10d   :  { %4277 = vmatpush3.bf16.msra.mxu0 %v4795_v56  ;;  %3912 = vmatmul.mubr.msk.f32.vlgmr.msra.gmra.mrb[6].mxu1 %vm80_vm1, %v3593_v59 }
 0x10e   :  { %4284 = vmatprep.subr.bf16.mxu0 %v4600_v2  ;;  %4283 = vmatpush3.bf16.msra.mxu1 %v4662_v7 }
 0x10f   :  { %3918 = vmatprep.mubr.msk.f32.mxu1 %vm4601_vm0, %v4602_v4  ;;  %4287 = vmatprep.subr.bf16.mxu1 %v4600_v2 }
 0x110   :  { %3905 = vmatmul.mubr.msk.f32.vlgmr.msra.gmra.mrb[6].mxu0 %vm526_vm2, %v4782_v53 }
 0x111   :  { %4286 = vmatpush3.bf16.msra.mxu0 %v4676_v11  ;;  %3925 = vmatprep.mubr.msk.f32.mxu0 %vm4601_vm0, %v4602_v4 }
 0x112   :  { %4299 = vmatprep.subr.bf16.mxu0 %v4600_v2  ;;  %3919 = vmatmul.mubr.msk.f32.vlgmr.msra.gmra.mrb[8].mxu1 %vm80_vm1, %v3593_v59 }
 0x113   :  { %4289 = vmatpush3.bf16.msra.mxu1 %v4721_v19  ;;  %3936 = vmatprep.mubr.msk.f32.mxu1 %vm4601_vm0, %v4602_v4 }
 0x114   :  { %3926 = vmatmul.mubr.msk.f32.vlgmr.msra.gmra.mrb[8].mxu0 %vm80_vm1, %v3593_v59  ;;  %4290 = vmatprep.subr.bf16.mxu1 %v4600_v2 }
 0x115   :  { %4301 = vmatpush3.bf16.msra.mxu0 %v4780_v52  ;;  %3958 = vmatprep.mubr.msk.f32.mxu0 %vm4601_vm0, %v4602_v4 }
 0x116   :  { %4302 = vmatprep.subr.bf16.mxu0 %v4600_v2 }
 0x117   :  { %4292 = vmatpush3.bf16.msra.mxu1 %v4741_v24 }
 0x118   :  { %4293 = vmatprep.subr.bf16.mxu1 %v4600_v2 }
 0x119   :  { %4304 = vmatpush3.bf16.msra.mxu0 %v4795_v56 }
 0x11a   :  { %4305 = vmatprep.subr.bf16.mxu0 %v4600_v2 }
 0x1db   :  { %v596_v60 = vpop.f32.mrb[2].mxu1  ;;  %v666_v61 = vpop.f32.mrb[4].mxu0 }
 0x1dc   :  { %v4446_v62 = vadd.f32 %v4753_v25, %v596_v60  ;;  %v3884_v63 = vpop.f32.mrb[3].mxu1  ;;  %v3895_v0 = vpop.f32.mrb[5].mxu0  ;;  %v4447_v5 = vadd.f32 %v4758_v26, %v666_v61 }
 0x1de   :  { %v3590_v1 = vmul.f32 -1.442695, %v4446_v62  ;;  %v3591_v6 = vmul.f32 -1.442695, %v4447_v5  ;;  %v3611_v5 = vld [vmem:[%s5097_s0 + $0x8] sm:$0x3] }
 0x1e0   :  { %4502 = vpow2.f32 %v3590_v1 }
 0x1e1   :  { %4504 = vpow2.f32 %v3591_v6 }
 0x1e3   :  { %v750_v8 = vpop.f32.mrb[6].mxu0 }
 0x1e4   :  { %v3906_v9 = vpop.f32.mrb[7].mxu0  ;;  %v751_v16 = vadd.f32 %v4770_v42, %v750_v8 }
 0x1e7   :  { %v972_v32 = vpop.f32.mrb[8].mxu0 }
 0x1e8   :  { %v3927_v33 = vpop.f32.mrb[9].mxu0  ;;  %v973_v54 = vadd.f32 %v4765_v41, %v972_v32 }
 0x1ea   :  { %v4503_v10 = vpop.eup %4502 }
 0x1eb   :  { %v674_v12 = vadd.f32 1.0, %v4503_v10  ;;  %v4505_v13 = vpop.eup %4504 }
 0x1ec   :  { %v681_v14 = vadd.f32 1.0, %v4505_v13 }
 0x1ed   :  { %4506 = vrcp.f32 %v674_v12 }
 0x1ee   :  { %4508 = vrcp.f32 %v681_v14 }
 0x1f7   :  { %v4507_v17 = vpop.eup %4506 }
 0x1f8   :  { %v754_v20 = vmul.f32 %v4507_v17, %v751_v16  ;;  %v4509_v23 = vpop.eup %4508 }
 0x1f9   :  { %v757_v27 = vsub.f32 1.0, %v4509_v23  ;;  %v759_v30 = vmul.f32 %v4509_v23, %v4782_v53 }
 0x1fa   :  { %v755_v22 = vadd.f32 %v754_v20, %v523_v18 }
 0x1fc   :  { %4510 = vtanh.f32 %v755_v22 }
 0x206   :  { %v4511_v28 = vpop.eup %4510 }
 0x207   :  { %v758_v29 = vmul.f32 %v4511_v28, %v757_v27 }
 0x209   :  { %v760_v31 = vadd.f32 %v759_v30, %v758_v29 }
 0x20b   :  { %3937 = vmatmul.mubr.msk.f32.vlgmr.msra.gmra.mrb[6].mxu1 %vm526_vm2, %v760_v31  ;;  %3959 = vmatmul.mubr.msk.f32.vlgmr.msra.gmra.mrb[10].mxu0 %vm526_vm2, %v760_v31 }
 0x20c   :  { %4295 = vmatpush3.bf16.msra.mxu1 %v4707_v15  ;;  %3947 = vmatprep.mubr.msk.f32.mxu1 %vm4601_vm0, %v4602_v4 }
 0x20d   :  { %4296 = vmatprep.subr.bf16.mxu1 %v4600_v2  ;;  %4307 = vmatpush3.bf16.msra.mxu0 %v4651_v3 }
 0x20e   :  { %3965 = vmatprep.mubr.msk.f32.mxu0 %vm4601_vm0, %v4602_v4  ;;  %4308 = vmatprep.subr.bf16.mxu0 %v4600_v2 }
 0x210   :  { %4298 = vmatpush3.bf16.msra.mxu1 %v4728_v21  ;;  %3966 = vmatmul.mubr.msk.f32.vlgmr.msra.gmra.mrb[12].mxu0 %vm80_vm1, %v3602_v34 }
 0x211   :  { %4311 = vmatprep.subr.bf16.mxu1 %v4600_v2  ;;  %4310 = vmatpush3.bf16.msra.mxu0 %v4662_v7 }
 0x212   :  { %3972 = vmatprep.mubr.msk.f32.mxu0 %vm4601_vm0, %v4602_v4  ;;  %4314 = vmatprep.subr.bf16.mxu0 %v4600_v2 }
 0x213   :  { %3948 = vmatmul.mubr.msk.f32.vlgmr.msra.gmra.mrb[8].mxu1 %vm526_vm2, %v760_v31 }
 0x214   :  { %4313 = vmatpush3.bf16.msra.mxu1 %v4676_v11  ;;  %3979 = vmatprep.mubr.msk.f32.mxu1 %vm4601_vm0, %v4602_v4 }
 0x215   :  { %4326 = vmatprep.subr.bf16.mxu1 %v4600_v2  ;;  %3973 = vmatmul.mubr.msk.f32.vlgmr.msra.gmra.mrb[14].mxu0 %vm80_vm1, %v3602_v34 }
 0x216   :  { %4316 = vmatpush3.bf16.msra.mxu0 %v4721_v19  ;;  %3990 = vmatprep.mubr.msk.f32.mxu0 %vm4601_vm0, %v4602_v4 }
 0x217   :  { %3980 = vmatmul.mubr.msk.f32.vlgmr.msra.gmra.mrb[10].mxu1 %vm80_vm1, %v3602_v34  ;;  %4317 = vmatprep.subr.bf16.mxu0 %v4600_v2 }
 0x218   :  { %4328 = vmatpush3.bf16.msra.mxu1 %v4780_v52  ;;  %4012 = vmatprep.mubr.msk.f32.mxu1 %vm4601_vm0, %v4602_v4 }
 0x219   :  { %4329 = vmatprep.subr.bf16.mxu1 %v4600_v2 }
 0x21a   :  { %4319 = vmatpush3.bf16.msra.mxu0 %v4741_v24 }
 0x21b   :  { %4320 = vmatprep.subr.bf16.mxu0 %v4600_v2 }
 0x21c   :  { %4331 = vmatpush3.bf16.msra.mxu1 %v4795_v56 }
 0x21d   :  { %4332 = vmatprep.subr.bf16.mxu1 %v4600_v2 }
 0x2de   :  { %v1045_v35 = vpop.f32.mrb[6].mxu1  ;;  %v1199_v36 = vpop.f32.mrb[10].mxu0 }
 0x2df   :  { %v4448_v37 = vadd.f32 %v4753_v25, %v1045_v35  ;;  %v3938_v38 = vpop.f32.mrb[7].mxu1  ;;  %v3960_v39 = vpop.f32.mrb[11].mxu0  ;;  %v1200_v51 = vadd.f32 %v4770_v42, %v1199_v36 }
 0x2e1   :  { %v3599_v40 = vmul.f32 -1.442695, %v4448_v37 }
 0x2e3   :  { %4512 = vpow2.f32 %v3599_v40 }
 0x2e6   :  { %v1115_v43 = vpop.f32.mrb[8].mxu1 }
 0x2e7   :  { %v4449_v44 = vadd.f32 %v4758_v26, %v1115_v43  ;;  %v3949_v45 = vpop.f32.mrb[9].mxu1  ;;  %v3620_v43 = vld [vmem:[%s5097_s0 + $0xa] sm:$0x3] }
 0x2e9   :  { %v3600_v46 = vmul.f32 -1.442695, %v4449_v44 }
 0x2ea   :  { %v1421_v0 = vpop.f32.mrb[10].mxu1 }
 0x2eb   :  { %4514 = vpow2.f32 %v3600_v46  ;;  %v3981_v1 = vpop.f32.mrb[11].mxu1  ;;  %v1422_v30 = vadd.f32 %v4765_v41, %v1421_v0 }
 0x2ed   :  { %v4513_v47 = vpop.eup %4512 }
 0x2ee   :  { %v1123_v48 = vadd.f32 1.0, %v4513_v47 }
 0x2f0   :  { %4516 = vrcp.f32 %v1123_v48 }
 0x2f5   :  { %v4515_v49 = vpop.eup %4514 }
 0x2f6   :  { %v1130_v50 = vadd.f32 1.0, %v4515_v49 }
 0x2f8   :  { %4518 = vrcp.f32 %v1130_v50 }
 0x2fa   :  { %v4517_v53 = vpop.eup %4516 }
 0x2fb   :  { %v1203_v55 = vmul.f32 %v4517_v53, %v1200_v51 }
 0x2fd   :  { %v1204_v57 = vadd.f32 %v1203_v55, %v973_v54 }
 0x2ff   :  { %4520 = vtanh.f32 %v1204_v57 }
 0x302   :  { %v4519_v58 = vpop.eup %4518 }
 0x303   :  { %v1206_v59 = vsub.f32 1.0, %v4519_v58  ;;  %v1208_v62 = vmul.f32 %v4519_v58, %v760_v31 }
 0x309   :  { %v4521_v60 = vpop.eup %4520 }
 0x30a   :  { %v1207_v61 = vmul.f32 %v4521_v60, %v1206_v59 }
 0x30c   :  { %v1209_v63 = vadd.f32 %v1208_v62, %v1207_v61 }
 0x30e   :  { %3991 = vmatmul.mubr.msk.f32.vlgmr.msra.gmra.mrb[12].mxu0 %vm526_vm2, %v1209_v63  ;;  %4013 = vmatmul.mubr.msk.f32.vlgmr.msra.gmra.mrb[12].mxu1 %vm526_vm2, %v1209_v63 }
 0x30f   :  { %4322 = vmatpush3.bf16.msra.mxu0 %v4707_v15  ;;  %4001 = vmatprep.mubr.msk.f32.mxu0 %vm4601_vm0, %v4602_v4 }
 0x310   :  { %4323 = vmatprep.subr.bf16.mxu0 %v4600_v2  ;;  %4334 = vmatpush3.bf16.msra.mxu1 %v4651_v3 }
 0x311   :  { %4019 = vmatprep.mubr.msk.f32.mxu1 %vm4601_vm0, %v4602_v4  ;;  %4335 = vmatprep.subr.bf16.mxu1 %v4600_v2 }
 0x313   :  { %4325 = vmatpush3.bf16.msra.mxu0 %v4728_v21  ;;  %4020 = vmatmul.mubr.msk.f32.vlgmr.msra.gmra.mrb[14].mxu1 %vm80_vm1, %v3611_v5 }
 0x314   :  { %4338 = vmatprep.subr.bf16.mxu0 %v4600_v2  ;;  %4337 = vmatpush3.bf16.msra.mxu1 %v4662_v7 }
 0x315   :  { %4026 = vmatprep.mubr.msk.f32.mxu1 %vm4601_vm0, %v4602_v4  ;;  %4341 = vmatprep.subr.bf16.mxu1 %v4600_v2 }
 0x316   :  { %4002 = vmatmul.mubr.msk.f32.vlgmr.msra.gmra.mrb[14].mxu0 %vm526_vm2, %v1209_v63 }
 0x317   :  { %4340 = vmatpush3.bf16.msra.mxu0 %v4676_v11  ;;  %4033 = vmatprep.mubr.msk.f32.mxu0 %vm4601_vm0, %v4602_v4 }
 0x318   :  { %4353 = vmatprep.subr.bf16.mxu0 %v4600_v2  ;;  %4027 = vmatmul.mubr.msk.f32.vlgmr.msra.gmra.mrb[16].mxu1 %vm80_vm1, %v3611_v5 }
 0x319   :  { %4343 = vmatpush3.bf16.msra.mxu1 %v4721_v19  ;;  %4044 = vmatprep.mubr.msk.f32.mxu1 %vm4601_vm0, %v4602_v4 }
 0x31a   :  { %4034 = vmatmul.mubr.msk.f32.vlgmr.msra.gmra.mrb[16].mxu0 %vm80_vm1, %v3611_v5  ;;  %4344 = vmatprep.subr.bf16.mxu1 %v4600_v2 }
 0x31b   :  { %4355 = vmatpush3.bf16.msra.mxu0 %v4780_v52  ;;  %4066 = vmatprep.mubr.msk.f32.mxu0 %vm4601_vm0, %v4602_v4 }
 0x31c   :  { %4356 = vmatprep.subr.bf16.mxu0 %v4600_v2 }
 0x31d   :  { %4346 = vmatpush3.bf16.msra.mxu1 %v4741_v24 }
 0x31e   :  { %4347 = vmatprep.subr.bf16.mxu1 %v4600_v2 }
 0x31f   :  { %4358 = vmatpush3.bf16.msra.mxu0 %v4795_v56 }
 0x320   :  { %4359 = vmatprep.subr.bf16.mxu0 %v4600_v2 }
 0x3e1   :  { %v1494_v6 = vpop.f32.mrb[12].mxu0  ;;  %v1648_v8 = vpop.f32.mrb[12].mxu1 }
 0x3e2   :  { %v4450_v9 = vadd.f32 %v4753_v25, %v1494_v6  ;;  %v3992_v10 = vpop.f32.mrb[13].mxu0  ;;  %v4014_v12 = vpop.f32.mrb[13].mxu1  ;;  %v1649_v28 = vadd.f32 %v4770_v42, %v1648_v8 }
 0x3e4   :  { %v3608_v13 = vmul.f32 -1.442695, %v4450_v9 }
 0x3e6   :  { %4522 = vpow2.f32 %v3608_v13 }
 0x3e9   :  { %v1564_v14 = vpop.f32.mrb[14].mxu0 }
 0x3ea   :  { %v4451_v16 = vadd.f32 %v4758_v26, %v1564_v14  ;;  %v4003_v17 = vpop.f32.mrb[15].mxu0  ;;  %v3629_v14 = vld [vmem:[%s5097_s0 + $0xc] sm:$0x3] }
 0x3ec   :  { %v3609_v18 = vmul.f32 -1.442695, %v4451_v16 }
 0x3ed   :  { %v1870_v39 = vpop.f32.mrb[16].mxu0 }
 0x3ee   :  { %4524 = vpow2.f32 %v3609_v18  ;;  %v4035_v40 = vpop.f32.mrb[17].mxu0  ;;  %v1871_v62 = vadd.f32 %v4765_v41, %v1870_v39 }
 0x3f0   :  { %v4523_v20 = vpop.eup %4522 }
 0x3f1   :  { %v1572_v22 = vadd.f32 1.0, %v4523_v20 }
 0x3f3   :  { %4526 = vrcp.f32 %v1572_v22 }
 0x3f8   :  { %v4525_v23 = vpop.eup %4524 }
 0x3f9   :  { %v1579_v27 = vadd.f32 1.0, %v4525_v23 }
 0x3fb   :  { %4528 = vrcp.f32 %v1579_v27 }
 0x3fd   :  { %v4527_v29 = vpop.eup %4526 }
 0x3fe   :  { %v1652_v31 = vmul.f32 %v4527_v29, %v1649_v28 }
 0x400   :  { %v1653_v32 = vadd.f32 %v1652_v31, %v1422_v30 }
 0x402   :  { %4530 = vtanh.f32 %v1653_v32 }
 0x405   :  { %v4529_v33 = vpop.eup %4528 }
 0x406   :  { %v1655_v34 = vsub.f32 1.0, %v4529_v33  ;;  %v1657_v37 = vmul.f32 %v4529_v33, %v1209_v63 }
 0x40c   :  { %v4531_v35 = vpop.eup %4530 }
 0x40d   :  { %v1656_v36 = vmul.f32 %v4531_v35, %v1655_v34 }
 0x40f   :  { %v1658_v38 = vadd.f32 %v1657_v37, %v1656_v36 }
 0x411   :  { %4045 = vmatmul.mubr.msk.f32.vlgmr.msra.gmra.mrb[14].mxu1 %vm526_vm2, %v1658_v38  ;;  %4067 = vmatmul.mubr.msk.f32.vlgmr.msra.gmra.mrb[18].mxu0 %vm526_vm2, %v1658_v38 }
 0x412   :  { %4349 = vmatpush3.bf16.msra.mxu1 %v4707_v15  ;;  %4055 = vmatprep.mubr.msk.f32.mxu1 %vm4601_vm0, %v4602_v4 }
 0x413   :  { %4350 = vmatprep.subr.bf16.mxu1 %v4600_v2  ;;  %4361 = vmatpush3.bf16.msra.mxu0 %v4651_v3 }
 0x414   :  { %4073 = vmatprep.mubr.msk.f32.mxu0 %vm4601_vm0, %v4602_v4  ;;  %4362 = vmatprep.subr.bf16.mxu0 %v4600_v2 }
 0x416   :  { %4352 = vmatpush3.bf16.msra.mxu1 %v4728_v21  ;;  %4074 = vmatmul.mubr.msk.f32.vlgmr.msra.gmra.mrb[20].mxu0 %vm80_vm1, %v3620_v43 }
 0x417   :  { %4365 = vmatprep.subr.bf16.mxu1 %v4600_v2  ;;  %4364 = vmatpush3.bf16.msra.mxu0 %v4662_v7 }
 0x418   :  { %4080 = vmatprep.mubr.msk.f32.mxu0 %vm4601_vm0, %v4602_v4  ;;  %4368 = vmatprep.subr.bf16.mxu0 %v4600_v2 }
 0x419   :  { %4056 = vmatmul.mubr.msk.f32.vlgmr.msra.gmra.mrb[16].mxu1 %vm526_vm2, %v1658_v38 }
 0x41a   :  { %4367 = vmatpush3.bf16.msra.mxu1 %v4676_v11  ;;  %4087 = vmatprep.mubr.msk.f32.mxu1 %vm4601_vm0, %v4602_v4 }
 0x41b   :  { %4380 = vmatprep.subr.bf16.mxu1 %v4600_v2  ;;  %4081 = vmatmul.mubr.msk.f32.vlgmr.msra.gmra.mrb[22].mxu0 %vm80_vm1, %v3620_v43 }
 0x41c   :  { %4370 = vmatpush3.bf16.msra.mxu0 %v4721_v19  ;;  %4098 = vmatprep.mubr.msk.f32.mxu0 %vm4601_vm0, %v4602_v4 }
 0x41d   :  { %4088 = vmatmul.mubr.msk.f32.vlgmr.msra.gmra.mrb[18].mxu1 %vm80_vm1, %v3620_v43  ;;  %4371 = vmatprep.subr.bf16.mxu0 %v4600_v2 }
 0x41e   :  { %4382 = vmatpush3.bf16.msra.mxu1 %v4780_v52  ;;  %4120 = vmatprep.mubr.msk.f32.mxu1 %vm4601_vm0, %v4602_v4 }
 0x41f   :  { %4383 = vmatprep.subr.bf16.mxu1 %v4600_v2 }
 0x420   :  { %4373 = vmatpush3.bf16.msra.mxu0 %v4741_v24 }
 0x421   :  { %4374 = vmatprep.subr.bf16.mxu0 %v4600_v2 }
 0x422   :  { %4385 = vmatpush3.bf16.msra.mxu1 %v4795_v56 }
 0x423   :  { %4386 = vmatprep.subr.bf16.mxu1 %v4600_v2 }
 0x4e4   :  { %v1943_v44 = vpop.f32.mrb[14].mxu1  ;;  %v2097_v45 = vpop.f32.mrb[18].mxu0 }
 0x4e5   :  { %v4452_v46 = vadd.f32 %v4753_v25, %v1943_v44  ;;  %v4046_v47 = vpop.f32.mrb[15].mxu1  ;;  %v4068_v48 = vpop.f32.mrb[19].mxu0  ;;  %v2098_v60 = vadd.f32 %v4770_v42, %v2097_v45 }
 0x4e7   :  { %v3617_v49 = vmul.f32 -1.442695, %v4452_v46 }
 0x4e9   :  { %4532 = vpow2.f32 %v3617_v49  ;;  %v3638_v49 = vld [vmem:[%s5097_s0 + $0xe] sm:$0x3] }
 0x4ec   :  { %v2013_v50 = vpop.f32.mrb[16].mxu1 }
 0x4ed   :  { %v4453_v51 = vadd.f32 %v4758_v26, %v2013_v50  ;;  %v4057_v53 = vpop.f32.mrb[17].mxu1 }
 0x4ef   :  { %v3618_v54 = vmul.f32 -1.442695, %v4453_v51 }
 0x4f0   :  { %v2319_v12 = vpop.f32.mrb[18].mxu1 }
 0x4f1   :  { %4534 = vpow2.f32 %v3618_v54  ;;  %v4089_v13 = vpop.f32.mrb[19].mxu1  ;;  %v2320_v37 = vadd.f32 %v4765_v41, %v2319_v12 }
 0x4f3   :  { %v4533_v55 = vpop.eup %4532 }
 0x4f4   :  { %v2021_v57 = vadd.f32 1.0, %v4533_v55 }
 0x4f6   :  { %4536 = vrcp.f32 %v2021_v57 }
 0x4fb   :  { %v4535_v58 = vpop.eup %4534 }
 0x4fc   :  { %v2028_v59 = vadd.f32 1.0, %v4535_v58 }
 0x4fe   :  { %4538 = vrcp.f32 %v2028_v59 }
 0x500   :  { %v4537_v61 = vpop.eup %4536 }
 0x501   :  { %v2101_v63 = vmul.f32 %v4537_v61, %v2098_v60 }
 0x503   :  { %v2102_v0 = vadd.f32 %v2101_v63, %v1871_v62 }
 0x505   :  { %4540 = vtanh.f32 %v2102_v0 }
 0x508   :  { %v4539_v1 = vpop.eup %4538 }
 0x509   :  { %v2104_v5 = vsub.f32 1.0, %v4539_v1  ;;  %v2106_v9 = vmul.f32 %v4539_v1, %v1658_v38 }
 0x50f   :  { %v4541_v6 = vpop.eup %4540 }
 0x510   :  { %v2105_v8 = vmul.f32 %v4541_v6, %v2104_v5 }
 0x512   :  { %v2107_v10 = vadd.f32 %v2106_v9, %v2105_v8 }
 0x514   :  { %4099 = vmatmul.mubr.msk.f32.vlgmr.msra.gmra.mrb[20].mxu0 %vm526_vm2, %v2107_v10  ;;  %4121 = vmatmul.mubr.msk.f32.vlgmr.msra.gmra.mrb[20].mxu1 %vm526_vm2, %v2107_v10 }
 0x515   :  { %4376 = vmatpush3.bf16.msra.mxu0 %v4707_v15  ;;  %4109 = vmatprep.mubr.msk.f32.mxu0 %vm4601_vm0, %v4602_v4 }
 0x516   :  { %4377 = vmatprep.subr.bf16.mxu0 %v4600_v2  ;;  %4388 = vmatpush3.bf16.msra.mxu1 %v4651_v3 }
 0x517   :  { %4127 = vmatprep.mubr.msk.f32.mxu1 %vm4601_vm0, %v4602_v4  ;;  %4389 = vmatprep.subr.bf16.mxu1 %v4600_v2 }
 0x519   :  { %4379 = vmatpush3.bf16.msra.mxu0 %v4728_v21  ;;  %4128 = vmatmul.mubr.msk.f32.vlgmr.msra.gmra.mrb[22].mxu1 %vm80_vm1, %v3629_v14 }
 0x51a   :  { %4392 = vmatprep.subr.bf16.mxu0 %v4600_v2  ;;  %4391 = vmatpush3.bf16.msra.mxu1 %v4662_v7 }
 0x51b   :  { %4134 = vmatprep.mubr.msk.f32.mxu1 %vm4601_vm0, %v4602_v4  ;;  %4395 = vmatprep.subr.bf16.mxu1 %v4600_v2 }
 0x51c   :  { %4110 = vmatmul.mubr.msk.f32.vlgmr.msra.gmra.mrb[22].mxu0 %vm526_vm2, %v2107_v10 }
 0x51d   :  { %4394 = vmatpush3.bf16.msra.mxu0 %v4676_v11  ;;  %4141 = vmatprep.mubr.msk.f32.mxu0 %vm4601_vm0, %v4602_v4 }
 0x51e   :  { %4407 = vmatprep.subr.bf16.mxu0 %v4600_v2  ;;  %4135 = vmatmul.mubr.msk.f32.vlgmr.msra.gmra.mrb[24].mxu1 %vm80_vm1, %v3629_v14 }
 0x51f   :  { %4397 = vmatpush3.bf16.msra.mxu1 %v4721_v19  ;;  %4152 = vmatprep.mubr.msk.f32.mxu1 %vm4601_vm0, %v4602_v4 }
 0x520   :  { %4142 = vmatmul.mubr.msk.f32.vlgmr.msra.gmra.mrb[24].mxu0 %vm80_vm1, %v3629_v14  ;;  %4398 = vmatprep.subr.bf16.mxu1 %v4600_v2  ;;  %v3455_v14 = vld [vmem:[%s5102_s5] sm:$0xff] }
 0x521   :  { %4409 = vmatpush3.bf16.msra.mxu0 %v4780_v52  ;;  %4174 = vmatprep.mubr.msk.f32.mxu0 %vm4601_vm0, %v4602_v4 }
 0x522   :  { %4410 = vmatprep.subr.bf16.mxu0 %v4600_v2 }
 0x523   :  { %4400 = vmatpush3.bf16.msra.mxu1 %v4741_v24 }
 0x524   :  { %4401 = vmatprep.subr.bf16.mxu1 %v4600_v2 }
 0x525   :  { %4412 = vmatpush3.bf16.msra.mxu0 %v4795_v56 }
 0x526   :  { %4413 = vmatprep.subr.bf16.mxu0 %v4600_v2 }
 0x5e7   :  { %v2392_v16 = vpop.f32.mrb[20].mxu0  ;;  %v2546_v17 = vpop.f32.mrb[20].mxu1 }
 0x5e8   :  { %v4454_v18 = vadd.f32 %v4753_v25, %v2392_v16  ;;  %v4100_v20 = vpop.f32.mrb[21].mxu0  ;;  %v4122_v22 = vpop.f32.mrb[21].mxu1  ;;  %v2547_v35 = vadd.f32 %v4770_v42, %v2546_v17  ;;  %v3457_v16 = vld [vmem:[%s5102_s5 + $0x10] sm:$0xff] }
 0x5ea   :  { %v3626_v23 = vmul.f32 -1.442695, %v4454_v18 }
 0x5ec   :  { %4542 = vpow2.f32 %v3626_v23 }
 0x5ef   :  { %v2462_v27 = vpop.f32.mrb[22].mxu0 }
 0x5f0   :  { %v4455_v28 = vadd.f32 %v4758_v26, %v2462_v27  ;;  %v4111_v29 = vpop.f32.mrb[23].mxu0 }
 0x5f2   :  { %v3627_v30 = vmul.f32 -1.442695, %v4455_v28 }
 0x5f3   :  { %v2768_v48 = vpop.f32.mrb[24].mxu0 }
 0x5f4   :  { %4544 = vpow2.f32 %v3627_v30  ;;  %v2769_v62 = vadd.f32 %v4765_v41, %v2768_v48 }
 0x5f6   :  { %v4543_v31 = vpop.eup %4542 }
 0x5f7   :  { %v2470_v32 = vadd.f32 1.0, %v4543_v31 }
 0x5f9   :  { %4546 = vrcp.f32 %v2470_v32 }
 0x5fe   :  { %v4545_v33 = vpop.eup %4544 }
 0x5ff   :  { %v2477_v34 = vadd.f32 1.0, %v4545_v33 }
 0x601   :  { %4548 = vrcp.f32 %v2477_v34 }
 0x603   :  { %v4547_v36 = vpop.eup %4546 }
 0x604   :  { %v2550_v38 = vmul.f32 %v4547_v36, %v2547_v35 }
 0x606   :  { %v2551_v39 = vadd.f32 %v2550_v38, %v2320_v37 }
 0x608   :  { %4550 = vtanh.f32 %v2551_v39 }
 0x60b   :  { %v4549_v40 = vpop.eup %4548 }
 0x60c   :  { %v2553_v43 = vsub.f32 1.0, %v4549_v40  ;;  %v2555_v46 = vmul.f32 %v4549_v40, %v2107_v10 }
 0x612   :  { %v4551_v44 = vpop.eup %4550 }
 0x613   :  { %v2554_v45 = vmul.f32 %v4551_v44, %v2553_v43 }
 0x615   :  { %v2556_v47 = vadd.f32 %v2555_v46, %v2554_v45 }
 0x617   :  { %4153 = vmatmul.mubr.msk.f32.vlgmr.msra.gmra.mrb[22].mxu1 %vm526_vm2, %v2556_v47  ;;  %4175 = vmatmul.mubr.msk.f32.vlgmr.msra.gmra.mrb[26].mxu0 %vm526_vm2, %v2556_v47 }
 0x618   :  { %4403 = vmatpush3.bf16.msra.mxu1 %v4707_v15  ;;  %4163 = vmatprep.mubr.msk.f32.mxu1 %vm4601_vm0, %v4602_v4 }
 0x619   :  { %4404 = vmatprep.subr.bf16.mxu1 %v4600_v2  ;;  %4415 = vmatpush3.bf16.msra.mxu0 %v4651_v3  ;;  %v4143_v3 = vpop.f32.mrb[25].mxu0 }
 0x61a   :  { %4181 = vmatprep.mubr.msk.f32.mxu0 %vm4601_vm0, %v4602_v4  ;;  %4416 = vmatprep.subr.bf16.mxu0 %v4600_v2 }
 0x61c   :  { %4406 = vmatpush3.bf16.msra.mxu1 %v4728_v21  ;;  %4182 = vmatmul.mubr.msk.f32.vlgmr.msra.gmra.mrb[28].mxu0 %vm80_vm1, %v3638_v49 }
 0x61d   :  { %4419 = vmatprep.subr.bf16.mxu1 %v4600_v2  ;;  %4418 = vmatpush3.bf16.msra.mxu0 %v4662_v7 }
 0x61e   :  { %4188 = vmatprep.mubr.msk.f32.mxu0 %vm4601_vm0, %v4602_v4  ;;  %4422 = vmatprep.subr.bf16.mxu0 %v4600_v2 }
 0x61f   :  { %4164 = vmatmul.mubr.msk.f32.vlgmr.msra.gmra.mrb[24].mxu1 %vm526_vm2, %v2556_v47 }
 0x620   :  { %4421 = vmatpush3.bf16.msra.mxu1 %v4676_v11  ;;  %4195 = vmatprep.mubr.msk.f32.mxu1 %vm4601_vm0, %v4602_v4 }
 0x621   :  { %4434 = vmatprep.subr.bf16.mxu1 %v4600_v2  ;;  %4189 = vmatmul.mubr.msk.f32.vlgmr.msra.gmra.mrb[30].mxu0 %vm80_vm1, %v3638_v49 }
 0x622   :  { %4424 = vmatpush3.bf16.msra.mxu0 %v4721_v19  ;;  %4206 = vmatprep.mubr.msk.f32.mxu0 %vm4601_vm0, %v4602_v4 }
 0x623   :  { %4196 = vmatmul.mubr.msk.f32.vlgmr.msra.gmra.mrb[26].mxu1 %vm80_vm1, %v3638_v49  ;;  %4425 = vmatprep.subr.bf16.mxu0 %v4600_v2 }
 0x624   :  { %4436 = vmatpush3.bf16.msra.mxu1 %v4780_v52  ;;  %4228 = vmatprep.mubr.msk.f32.mxu1 %vm4601_vm0, %v4602_v4 }
 0x625   :  { %4437 = vmatprep.subr.bf16.mxu1 %v4600_v2 }
 0x626   :  { %4427 = vmatpush3.bf16.msra.mxu0 %v4741_v24 }
 0x627   :  { %4428 = vmatprep.subr.bf16.mxu0 %v4600_v2 }
 0x628   :  { %4439 = vmatpush3.bf16.msra.mxu1 %v4795_v56 }
 0x629   :  { %4440 = vmatprep.subr.bf16.mxu1 %v4600_v2 }
 0x6ea   :  { %v2841_v7 = vpop.f32.mrb[22].mxu1  ;;  %v2995_v11 = vpop.f32.mrb[26].mxu0 }
 0x6eb   :  { %v4456_v52 = vadd.f32 %v4753_v25, %v2841_v7  ;;  %v4154_v50 = vpop.f32.mrb[23].mxu1  ;;  %v4176_v51 = vpop.f32.mrb[27].mxu0  ;;  %v2996_v60 = vadd.f32 %v4770_v42, %v2995_v11 }
 0x6ed   :  { %v3635_v19 = vmul.f32 -1.442695, %v4456_v52 }
 0x6ef   :  { %4552 = vpow2.f32 %v3635_v19 }
 0x6f2   :  { %v2911_v53 = vpop.f32.mrb[24].mxu1 }
 0x6f3   :  { %v4457_v54 = vadd.f32 %v4758_v26, %v2911_v53  ;;  %v4165_v55 = vpop.f32.mrb[25].mxu1 }
 0x6f5   :  { %v3636_v57 = vmul.f32 -1.442695, %v4457_v54 }
 0x6f6   :  { %v3217_v12 = vpop.f32.mrb[26].mxu1 }
 0x6f7   :  { %4554 = vpow2.f32 %v3636_v57  ;;  %v4197_v13 = vpop.f32.mrb[27].mxu1 }
 0x6f9   :  { %v4553_v56 = vpop.eup %4552 }
 0x6fa   :  { %v2919_v58 = vadd.f32 1.0, %v4553_v56 }
 0x6fc   :  { %4556 = vrcp.f32 %v2919_v58 }
 0x701   :  { %v4555_v24 = vpop.eup %4554 }
 0x702   :  { %v2926_v59 = vadd.f32 1.0, %v4555_v24 }
 0x704   :  { %4558 = vrcp.f32 %v2926_v59 }
 0x706   :  { %v4557_v61 = vpop.eup %4556 }
 0x707   :  { %v2999_v63 = vmul.f32 %v4557_v61, %v2996_v60 }
 0x709   :  { %v3000_v0 = vadd.f32 %v2999_v63, %v2769_v62 }
 0x70b   :  { %4560 = vtanh.f32 %v3000_v0 }
 0x70e   :  { %v4559_v1 = vpop.eup %4558 }
 0x70f   :  { %v3002_v5 = vsub.f32 1.0, %v4559_v1  ;;  %v3004_v9 = vmul.f32 %v4559_v1, %v2556_v47  ;;  %v3647_v47 = vld [vmem:[%s5103_s6] ss:$0 sm:$0xff] }
 0x715   :  { %v4561_v6 = vpop.eup %4560 }
 0x716   :  { %v3003_v8 = vmul.f32 %v4561_v6, %v3002_v5 }
 0x718   :  { %v3005_v10 = vadd.f32 %v3004_v9, %v3003_v8 }
 0x71a   :  { %4207 = vmatmul.mubr.msk.f32.vlgmr.msra.gmra.mrb[28].mxu0 %vm526_vm2, %v3005_v10  ;;  %4229 = vmatmul.mubr.msk.f32.vlgmr.msra.gmra.mrb[28].mxu1 %vm526_vm2, %v3005_v10 }
 0x71b   :  { %4430 = vmatpush3.bf16.msra.mxu0 %v4707_v15  ;;  %4217 = vmatprep.mubr.msk.f32.mxu0 %vm4601_vm0, %v4602_v4  ;;  %v3456_v15 = vld [vmem:[%s5102_s5 + $0x8] sm:$0xff] }
 0x71c   :  { %4431 = vmatprep.subr.bf16.mxu0 %v4600_v2  ;;  %4239 = vmatprep.mubr.msk.f32.mxu1 %vm4601_vm0, %v4602_v4  ;;  %v4441_v17 = vpack.c.bf16 %v3456_v15, %v3455_v14  ;;  %v3458_v4 = vld [vmem:[%s5102_s5 + $0x18] sm:$0xff] }
 0x71e   :  { %4442 = vmatpush3.bf16.msra.mxu1 %v4441_v17 }
 0x71f   :  { %4433 = vmatpush3.bf16.msra.mxu0 %v4728_v21  ;;  %v4444_v21 = vpack.c.bf16 %v3458_v4, %v3457_v16  ;;  %4443 = vmatprep.subr.bf16.mxu1 %v4600_v2 }
 0x722   :  { %4218 = vmatmul.mubr.msk.f32.vlgmr.msra.gmra.mrb[30].mxu0 %vm526_vm2, %v3005_v10  ;;  %4445 = vmatpush3.bf16.msra.mxu1 %v4444_v21 }
 0x7ed   :  { %v3290_v18 = vpop.f32.mrb[28].mxu0  ;;  %v3444_v20 = vpop.f32.mrb[28].mxu1 }
 0x7ee   :  { %v4458_v22 = vadd.f32 %v4753_v25, %v3290_v18  ;;  %v4208_v23 = vpop.f32.mrb[29].mxu0  ;;  %v4230_v27 = vpop.f32.mrb[29].mxu1  ;;  %v3445_v36 = vadd.f32 %v4770_v42, %v3444_v20  ;;  %v3218_v25 = vadd.f32 %v4765_v41, %v3217_v12 }
 0x7f0   :  { %v3644_v28 = vmul.f32 -1.442695, %v4458_v22 }
 0x7f2   :  { %4562 = vpow2.f32 %v3644_v28 }
 0x7f5   :  { %v3360_v29 = vpop.f32.mrb[30].mxu0 }
 0x7f6   :  { %v4459_v30 = vadd.f32 %v4758_v26, %v3360_v29  ;;  %v4219_v31 = vpop.f32.mrb[31].mxu0 }
 0x7f8   :  { %v3645_v32 = vmul.f32 -1.442695, %v4459_v30 }
 0x7fa   :  { %4564 = vpow2.f32 %v3645_v32 }
 0x7fc   :  { %v4563_v33 = vpop.eup %4562 }
 0x7fd   :  { %v3368_v34 = vadd.f32 1.0, %v4563_v33 }
 0x7ff   :  { %4566 = vrcp.f32 %v3368_v34 }
 0x804   :  { %v4565_v35 = vpop.eup %4564 }
 0x805   :  { %v3375_v2 = vadd.f32 1.0, %v4565_v35 }
 0x807   :  { %4568 = vrcp.f32 %v3375_v2 }
 0x809   :  { %v4567_v37 = vpop.eup %4566 }
 0x80a   :  { %v3448_v38 = vmul.f32 %v4567_v37, %v3445_v36 }
 0x80c   :  { %v3449_v39 = vadd.f32 %v3448_v38, %v3218_v25 }
 0x80e   :  { %4570 = vtanh.f32 %v3449_v39 }
 0x811   :  { %v4569_v40 = vpop.eup %4568 }
 0x812   :  { %v3451_v43 = vsub.f32 1.0, %v4569_v40  ;;  %v3453_v45 = vmul.f32 %v4569_v40, %v3005_v10 }
 0x818   :  { %v4571_v26 = vpop.eup %4570 }
 0x819   :  { %v3452_v44 = vmul.f32 %v4571_v26, %v3451_v43 }
 0x81b   :  { %v3454_v46 = vadd.f32 %v3453_v45, %v3452_v44 }
 0x81d   :  { %4240 = vmatmul.mubr.msk.f32.vlgmr.msra.gmra.mrb[30].mxu1 %vm526_vm2, %v3454_v46 }
 0x8f0   :  { %v3535_v42 = vpop.f32.mrb[30].mxu1 }
 0x8f1   :  { %v3536_v48 = vadd.f32 %v3647_v47, %v3535_v42  ;;  %v4241_v3 = vpop.f32.mrb[31].mxu1 }
 0x8f3   :  { %v3649_v41 = vmul.f32 -1.442695, %v3536_v48 }
 0x8f5   :  { %4572 = vpow2.f32 %v3649_v41 }
 0x8ff   :  { %v4573_v49 = vpop.eup %4572 }
 0x900   :  { %v3542_v7 = vadd.f32 1.0, %v4573_v49 }
 0x902   :  { %4574 = vrcp.f32 %v3542_v7 }
 0x90c   :  { %v4575_v11 = vpop.eup %4574 }
 0x90d   :  { %3546 = vst.msk [vmem:[#allocation2] sm:$0x3] %vm3545_vm3, %v4575_v11 }
 0x90e   :  { %4587 = shalt.err (!%p4584_p4)
}
 0x90f   :  { %s4588_s19 = scalar_lea.hbm %s5104_s7, 32 }
 0x910   :  { %p4589_p5 = scmp.ne.s32.totalorder %s5104_s7, %s4588_s19  ;;  %p4592_p6 = scmp.lt.u32.totalorder %s4588_s19, %s5104_s7 }
 0x912   :  { %p4594_p7 = pnand %p4592_p6, %p4589_p5 }
 0x914   :  { %4597 = shalt.err (!%p4594_p7)
}
 0x915   :  { %3556 = dma.vmem_to_hbm [thread:$0]  %s3554_s3, 32, %s5104_s7, [#allocation3]  }
 0x916   :  { %4598 = dma.done.wait [#allocation3], 32  }
 0x917   :  { %4599 = vsyncadd [#allocation3], 4294967264 }
 0x918   :  { %3560 = vsyncpa [#allocation3], 1 }

</bundles_post_ra>
